<compile_context>
chip_gen: v7x
topology: tpu7x:2x2x1
jax: 0.10.0
libtpu: 0.0.40
codegen_flags: <defaults>
</compile_context>

<pallas_src>
import functools
import math

import jax
import jax.numpy as jnp
from jax.experimental import pallas as pl
from jax.experimental.pallas import tpu as pltpu

# ----------------------------- model configuration -----------------------------
HIDDEN = 128          # synthetic stand-in for BERT's 768
NUM_HEADS = 2
HEAD_DIM = HIDDEN // NUM_HEADS
INTERMEDIATE = 256
NUM_LAYERS = 2
CLASS_NUM = 9         # num_labels=9 in the reference
CPAD = 128            # classifier output padded to a full 128-lane slab
GLOB_W = max(HIDDEN, CPAD)
LORA_R = 8
LORA_ALPHA = 32
LORA_SCALE = LORA_ALPHA / LORA_R   # PEFT scaling = alpha / r
LN_EPS = 1e-12
# lora_dropout=0.1 is identity at inference; not modelled.


def _layernorm(h, g, b, eps=LN_EPS):
    mu = jnp.mean(h, axis=-1, keepdims=True)
    var = jnp.mean(jnp.square(h - mu), axis=-1, keepdims=True)
    return (h - mu) * jax.lax.rsqrt(var + eps) * g + b


# ------------------------------- fused Pallas kernel ----------------------------
def fused_encoder_kernel(emb_ref, glob_ref, wqkv_ref, wo_ref, wi_ref, wo2_ref,
                         vec_ref, cls_w_ref, out_ref, *, num_layers):
    """One grid step = one batch item's (S, H) row slab, all layers unrolled."""

    def mm(a, w):                                   # MXU: bf16 operands, f32 acc
        return jnp.dot(a.astype(jnp.bfloat16), w,
                       preferred_element_type=jnp.float32)

    emb_g = glob_ref[0:1, :HIDDEN]
    emb_b = glob_ref[1:2, :HIDDEN]
    cls_b = glob_ref[2:3, :CPAD]

    # ---- embedding LayerNorm for this row block ----
    h = _layernorm(emb_ref[...], emb_g, emb_b)      # (S, H) f32

    inv_sqrt_d = 1.0 / math.sqrt(HEAD_DIM)
    for l in range(num_layers):                     # unrolled: L is tiny & static
        vec = vec_ref[l]                            # (8, 3H) packed small vectors
        bqkv = vec[0:1, :]
        bi = vec[1:2, :INTERMEDIATE]
        bo = vec[2:3, 0 * HIDDEN:1 * HIDDEN]
        g1 = vec[2:3, 1 * HIDDEN:2 * HIDDEN]
        be1 = vec[2:3, 2 * HIDDEN:3 * HIDDEN]
        bo2 = vec[3:4, 0 * HIDDEN:1 * HIDDEN]
        g2 = vec[3:4, 1 * HIDDEN:2 * HIDDEN]
        be2 = vec[3:4, 2 * HIDDEN:3 * HIDDEN]

        # ---- fused QKV projection (LoRA already merged into wqkv offline) ----
        qkv = mm(h, wqkv_ref[l]) + bqkv             # (S, 3H) f32
        q = qkv[:, 0 * HIDDEN:1 * HIDDEN].astype(jnp.bfloat16)
        k = qkv[:, 1 * HIDDEN:2 * HIDDEN].astype(jnp.bfloat16)
        v = qkv[:, 2 * HIDDEN:3 * HIDDEN].astype(jnp.bfloat16)

        # ---- multi-head self-attention over this single example ----
        heads = []
        for h_i in range(NUM_HEADS):
            c0 = h_i * HEAD_DIM
            qh = q[:, c0:c0 + HEAD_DIM]
            kh = k[:, c0:c0 + HEAD_DIM]
            vh = v[:, c0:c0 + HEAD_DIM]
            s = jax.lax.dot_general(qh, kh, (((1,), (1,)), ((), ())),
                                    preferred_element_type=jnp.float32) * inv_sqrt_d
            s = s - jnp.max(s, axis=-1, keepdims=True)
            p = jnp.exp(s)
            p = p * pl.reciprocal(jnp.sum(p, axis=-1, keepdims=True), approx=True)
            heads.append(jnp.dot(p.astype(jnp.bfloat16), vh,
                                 preferred_element_type=jnp.float32))
        ctx = jnp.concatenate(heads, axis=-1)       # lane-dense (S, H)

        attn = mm(ctx, wo_ref[l]) + bo
        h1 = _layernorm(h + attn, g1, be1)

        # TODO(synk): HF BERT uses exact erf GELU; tanh approximation used here.
        inter = jax.nn.gelu(mm(h1, wi_ref[l]) + bi)
        ffn = mm(inter, wo2_ref[l]) + bo2
        h = _layernorm(h1 + ffn, g2, be2)

    # ---- token-classification head for this row block (lane-dense CPAD out) ----
    out_ref[...] = mm(h, cls_w_ref[...]) + cls_b


def run_fused_encoder(emb2d, fused, batch, seq):
    num_layers = fused['wqkv'].shape[0]
    rows = batch * seq
    kernel = functools.partial(fused_encoder_kernel, num_layers=num_layers)

    def constant(shape):
        n = len(shape)
        return pl.BlockSpec(shape, lambda b, n=n: (0,) * n)

    # Rough cost estimate so XLA schedules neighbors around the custom call.
    mm_flops = 2 * rows * num_layers * (
        HIDDEN * 3 * HIDDEN + HIDDEN * HIDDEN + 2 * HIDDEN * INTERMEDIATE)
    attn_flops = 2 * 2 * rows * seq * HIDDEN * num_layers   # scores + PV, all heads
    head_flops = 2 * rows * HIDDEN * CPAD
    bytes_w = sum(int(v.size) * v.dtype.itemsize for v in fused.values())
    cost = pl.CostEstimate(
        flops=mm_flops + attn_flops + head_flops,
        transcendentals=rows * num_layers * (seq * NUM_HEADS + INTERMEDIATE),
        bytes_accessed=bytes_w + int(emb2d.size) * 4 + rows * CPAD * 4)

    return pl.pallas_call(
        kernel,
        out_shape=jax.ShapeDtypeStruct((rows, CPAD), jnp.float32),
        grid=(batch,),
        in_specs=[
            pl.BlockSpec((seq, HIDDEN), lambda b: (b, 0)),        # this item's rows
            constant((8, GLOB_W)),                                # emb LN + cls bias
            constant((num_layers, HIDDEN, 3 * HIDDEN)),           # fused QKV w (bf16)
            constant((num_layers, HIDDEN, HIDDEN)),               # attn out w (bf16)
            constant((num_layers, HIDDEN, INTERMEDIATE)),         # FFN in w (bf16)
            constant((num_layers, INTERMEDIATE, HIDDEN)),         # FFN out w (bf16)
            constant((num_layers, 8, 3 * HIDDEN)),                # packed small vecs
            constant((HIDDEN, CPAD)),                             # classifier w (bf16)
        ],
        out_specs=pl.BlockSpec((seq, CPAD), lambda b: (b, 0)),
        compiler_params=pltpu.CompilerParams(
            dimension_semantics=("parallel",)),                   # v7x: 2 TCs busy
        cost_estimate=cost,
    )(emb2d, fused['glob'], fused['wqkv'], fused['wo'], fused['wi'],
      fused['wo2'], fused['vec'], fused['cls_w'])


# ------------------------------ parameter init ----------------------------------
def init_params(key, cfg):
    H, V = cfg['hidden_size'], cfg['vocab_size'] + 1
    L, I, C, R = cfg['num_layers'], cfg['intermediate_size'], cfg['class_num'], LORA_R
    keys = iter(jax.random.split(key, 8 + 16 * L))

    def nrm(shape, s=0.02):
        return (s * jax.random.normal(next(keys), shape)).astype(jnp.float32)

    params = {
        'word_emb': nrm((V, H)).at[0].set(0.0),      # padding_idx = 0
        'pos_emb': nrm((cfg['max_length'], H)),
        'type_emb': nrm((2, H)),
        'emb_ln_g': jnp.ones((H,), jnp.float32),
        'emb_ln_b': jnp.zeros((H,), jnp.float32),
        'cls_w': nrm((H, C)),
        'cls_b': jnp.zeros((C,), jnp.float32),
        'layers': [],
    }
    for _ in range(L):
        layer = {}
        for p in ('q', 'k', 'v'):
            layer['w' + p] = nrm((H, H))
            layer['b' + p] = jnp.zeros((H,), jnp.float32)
            layer['lora_a_' + p] = nrm((H, R))
            layer['lora_b_' + p] = jnp.zeros((R, H), jnp.float32)  # PEFT init: B = 0
        layer['wo'] = nrm((H, H)); layer['bo'] = jnp.zeros((H,), jnp.float32)
        layer['g1'] = jnp.ones((H,), jnp.float32); layer['be1'] = jnp.zeros((H,), jnp.float32)
        layer['wi'] = nrm((H, I)); layer['bi'] = jnp.zeros((I,), jnp.float32)
        layer['wo2'] = nrm((I, H)); layer['bo2'] = jnp.zeros((H,), jnp.float32)
        layer['g2'] = jnp.ones((H,), jnp.float32); layer['be2'] = jnp.zeros((H,), jnp.float32)
        params['layers'].append(layer)
    return params


def prepare_fused_params(params):
    """Merge LoRA into base weights, fuse QKV, stack per-layer weights, pack vectors."""
    H = HIDDEN
    assert 3 * H >= INTERMEDIATE          # bi fits in one packed row
    wqkv, wo, wi, wo2, vec = [], [], [], [], []
    for lp in params['layers']:
        merged = [lp['w' + p] + LORA_SCALE * (lp['lora_a_' + p] @ lp['lora_b_' + p])
                  for p in ('q', 'k', 'v')]
        wqkv.append(jnp.concatenate(merged, axis=1))                  # (H, 3H)
        wo.append(lp['wo'])
        wi.append(lp['wi'])
        wo2.append(lp['wo2'])
        v = jnp.zeros((8, 3 * H), jnp.float32)
        v = v.at[0, :].set(jnp.concatenate([lp['bq'], lp['bk'], lp['bv']]))
        v = v.at[1, :INTERMEDIATE].set(lp['bi'])
        v = v.at[2, :].set(jnp.concatenate([lp['bo'], lp['g1'], lp['be1']]))
        v = v.at[3, :].set(jnp.concatenate([lp['bo2'], lp['g2'], lp['be2']]))
        vec.append(v)                                                 # (8, 3H)
    glob = jnp.zeros((8, GLOB_W), jnp.float32)
    glob = glob.at[0, :H].set(params['emb_ln_g'])
    glob = glob.at[1, :H].set(params['emb_ln_b'])
    glob = glob.at[2, :CLASS_NUM].set(params['cls_b'])
    cls_w = jnp.zeros((H, CPAD), jnp.float32).at[:, :CLASS_NUM].set(params['cls_w'])
    return {
        'wqkv': jnp.stack(wqkv).astype(jnp.bfloat16),
        'wo': jnp.stack(wo).astype(jnp.bfloat16),
        'wi': jnp.stack(wi).astype(jnp.bfloat16),
        'wo2': jnp.stack(wo2).astype(jnp.bfloat16),
        'vec': jnp.stack(vec).astype(jnp.float32),
        'glob': glob,
        'cls_w': cls_w.astype(jnp.bfloat16),
    }


# ------------------------------- forward pass ------------------------------------
def torch_model_forward(params, fused, ids, target=None, use_crf=False):
    """Equivalent of TorchModel.forward(x) with target=None, use_crf=False."""
    # TODO(synk): target branch (CrossEntropyLoss) and CRF branch are not implemented.
    B, S = ids.shape
    emb = (jnp.take(params['word_emb'], ids, axis=0)
           + params['pos_emb'][None, :S, :]
           + params['type_emb'][0][None, None, :])
    logits_pad = run_fused_encoder(emb.reshape(B * S, HIDDEN), fused, B, S)
    return logits_pad[:, :CLASS_NUM].reshape(B, S, CLASS_NUM)


# ----------------------------------- main ----------------------------------------
if __name__ == "__main__":
    cfg = dict(hidden_size=HIDDEN, vocab_size=100, max_length=16,
               class_num=CLASS_NUM, num_layers=NUM_LAYERS,
               intermediate_size=INTERMEDIATE, use_crf=False)

    key = jax.random.PRNGKey(0)
    pkey, xkey = jax.random.split(key)
    params = init_params(pkey, cfg)
    fused = prepare_fused_params(params)

    B, S = 2, 8
    ids = jax.random.randint(xkey, (B, S), 1, cfg['vocab_size'] + 1, dtype=jnp.int32)

    logits = torch_model_forward(params, fused, ids)
    logits = jax.block_until_ready(logits)

    assert logits.shape == (B, S, cfg['class_num']), logits.shape
    assert bool(jnp.all(jnp.isfinite(logits)))
    print("KERNEL_OK")
</pallas_src>

<mosaic_0001>
module attributes {stable_mosaic.version = 11 : i64} {
  func.func @fused_encoder_kernel(%arg0: i32, %arg1: memref<8x128xf32, #tpu.memory_space<vmem>>, %arg2: memref<8x128xf32, #tpu.memory_space<vmem>>, %arg3: memref<2x128x384xbf16, #tpu.memory_space<vmem>>, %arg4: memref<2x128x128xbf16, #tpu.memory_space<vmem>>, %arg5: memref<2x128x256xbf16, #tpu.memory_space<vmem>>, %arg6: memref<2x256x128xbf16, #tpu.memory_space<vmem>>, %arg7: memref<2x8x384xf32, #tpu.memory_space<vmem>>, %arg8: memref<128x128xbf16, #tpu.memory_space<vmem>>, %arg9: memref<8x128xf32, #tpu.memory_space<vmem>>) attributes {dimension_semantics = [#tpu.dimension_semantics<parallel>], iteration_bounds = array<i64: 2>, scalar_prefetch = 0 : i64, scratch_operands = 0 : i64, tpu.core_type = #tpu.core_type<tc>, window_params = [{transform_indices = @transform_0, window_bounds = array<i64: 8, 128>}, {pipeline_mode = #tpu.pipeline_mode<synchronous>, transform_indices = @transform_1, window_bounds = array<i64: 8, 128>}, {pipeline_mode = #tpu.pipeline_mode<synchronous>, transform_indices = @transform_2, window_bounds = array<i64: 2, 128, 384>}, {pipeline_mode = #tpu.pipeline_mode<synchronous>, transform_indices = @transform_3, window_bounds = array<i64: 2, 128, 128>}, {pipeline_mode = #tpu.pipeline_mode<synchronous>, transform_indices = @transform_4, window_bounds = array<i64: 2, 128, 256>}, {pipeline_mode = #tpu.pipeline_mode<synchronous>, transform_indices = @transform_5, window_bounds = array<i64: 2, 256, 128>}, {pipeline_mode = #tpu.pipeline_mode<synchronous>, transform_indices = @transform_6, window_bounds = array<i64: 2, 8, 384>}, {pipeline_mode = #tpu.pipeline_mode<synchronous>, transform_indices = @transform_7, window_bounds = array<i64: 128, 128>}, {transform_indices = @transform_8, window_bounds = array<i64: 8, 128>}]} {
    %c0 = arith.constant 0 : index
    %c0_0 = arith.constant 0 : index
    %0 = vector.load %arg2[%c0, %c0_0] : memref<8x128xf32, #tpu.memory_space<vmem>>, vector<1x128xf32>
    %c1 = arith.constant 1 : index
    %c0_1 = arith.constant 0 : index
    %1 = vector.load %arg2[%c1, %c0_1] : memref<8x128xf32, #tpu.memory_space<vmem>>, vector<1x128xf32>
    %c2 = arith.constant 2 : index
    %c0_2 = arith.constant 0 : index
    %2 = vector.load %arg2[%c2, %c0_2] : memref<8x128xf32, #tpu.memory_space<vmem>>, vector<1x128xf32>
    %c0_3 = arith.constant 0 : index
    %c0_4 = arith.constant 0 : index
    %3 = vector.load %arg1[%c0_3, %c0_4] : memref<8x128xf32, #tpu.memory_space<vmem>>, vector<8x128xf32>
    %cst = arith.constant dense<0.000000e+00> : vector<8xf32>
    %4 = vector.multi_reduction <add>, %3, %cst [1] : vector<8x128xf32> to vector<8xf32>
    %5 = vector.shape_cast %4 : vector<8xf32> to vector<8x1xf32>
    %cst_5 = arith.constant 1.280000e+02 : f32
    %6 = vector.broadcast %cst_5 : f32 to vector<8x1xf32>
    %7 = arith.divf %5, %6 : vector<8x1xf32>
    %8 = vector.broadcast %7 : vector<8x1xf32> to vector<8x128xf32>
    %9 = arith.subf %3, %8 : vector<8x128xf32>
    %10 = arith.mulf %9, %9 : vector<8x128xf32>
    %cst_6 = arith.constant dense<0.000000e+00> : vector<8xf32>
    %11 = vector.multi_reduction <add>, %10, %cst_6 [1] : vector<8x128xf32> to vector<8xf32>
    %12 = vector.shape_cast %11 : vector<8xf32> to vector<8x1xf32>
    %cst_7 = arith.constant 1.280000e+02 : f32
    %13 = vector.broadcast %cst_7 : f32 to vector<8x1xf32>
    %14 = arith.divf %12, %13 : vector<8x1xf32>
    %15 = vector.broadcast %7 : vector<8x1xf32> to vector<8x128xf32>
    %16 = arith.subf %3, %15 : vector<8x128xf32>
    %cst_8 = arith.constant 9.99999996E-13 : f32
    %17 = vector.broadcast %cst_8 : f32 to vector<8x1xf32>
    %18 = arith.addf %14, %17 : vector<8x1xf32>
    %19 = math.rsqrt %18 : vector<8x1xf32>
    %20 = vector.broadcast %19 : vector<8x1xf32> to vector<8x128xf32>
    %21 = arith.mulf %16, %20 : vector<8x128xf32>
    %22 = vector.broadcast %0 : vector<1x128xf32> to vector<8x128xf32>
    %23 = arith.mulf %21, %22 : vector<8x128xf32>
    %24 = vector.broadcast %1 : vector<1x128xf32> to vector<8x128xf32>
    %25 = arith.addf %23, %24 : vector<8x128xf32>
    %c0_9 = arith.constant 0 : index
    %c0_10 = arith.constant 0 : index
    %c0_11 = arith.constant 0 : index
    %26 = vector.load %arg7[%c0_9, %c0_10, %c0_11] : memref<2x8x384xf32, #tpu.memory_space<vmem>>, vector<1x8x384xf32>
    %27 = vector.shape_cast %26 : vector<1x8x384xf32> to vector<8x384xf32>
    %28 = vector.extract_strided_slice %27 {offsets = [0, 0], sizes = [1, 384], strides = [1, 1]} : vector<8x384xf32> to vector<1x384xf32>
    %29 = vector.extract_strided_slice %27 {offsets = [1, 0], sizes = [1, 256], strides = [1, 1]} : vector<8x384xf32> to vector<1x256xf32>
    %30 = vector.extract_strided_slice %27 {offsets = [2, 0], sizes = [1, 128], strides = [1, 1]} : vector<8x384xf32> to vector<1x128xf32>
    %31 = vector.extract_strided_slice %27 {offsets = [2, 128], sizes = [1, 128], strides = [1, 1]} : vector<8x384xf32> to vector<1x128xf32>
    %32 = vector.extract_strided_slice %27 {offsets = [2, 256], sizes = [1, 128], strides = [1, 1]} : vector<8x384xf32> to vector<1x128xf32>
    %33 = vector.extract_strided_slice %27 {offsets = [3, 0], sizes = [1, 128], strides = [1, 1]} : vector<8x384xf32> to vector<1x128xf32>
    %34 = vector.extract_strided_slice %27 {offsets = [3, 128], sizes = [1, 128], strides = [1, 1]} : vector<8x384xf32> to vector<1x128xf32>
    %35 = vector.extract_strided_slice %27 {offsets = [3, 256], sizes = [1, 128], strides = [1, 1]} : vector<8x384xf32> to vector<1x128xf32>
    %c0_12 = arith.constant 0 : index
    %c0_13 = arith.constant 0 : index
    %c0_14 = arith.constant 0 : index
    %36 = vector.load %arg3[%c0_12, %c0_13, %c0_14] : memref<2x128x384xbf16, #tpu.memory_space<vmem>>, vector<1x128x384xbf16>
    %37 = vector.shape_cast %36 : vector<1x128x384xbf16> to vector<128x384xbf16>
    %38 = arith.truncf %25 : vector<8x128xf32> to vector<8x128xbf16>
    %cst_15 = arith.constant dense<0.000000e+00> : vector<8x384xf32>
    %39 = tpu.matmul %38, %37, %cst_15 {dimension_numbers = #tpu.dot_dimension_numbers<[1], [0], [0], [1], [0, 0, 1, 1], [], []>} : vector<8x128xbf16>, vector<128x384xbf16>, vector<8x384xf32> -> vector<8x384xf32>
    %40 = vector.broadcast %28 : vector<1x384xf32> to vector<8x384xf32>
    %41 = arith.addf %39, %40 : vector<8x384xf32>
    %42 = vector.extract_strided_slice %41 {offsets = [0, 0], sizes = [8, 128], strides = [1, 1]} : vector<8x384xf32> to vector<8x128xf32>
    %43 = arith.truncf %42 : vector<8x128xf32> to vector<8x128xbf16>
    %44 = vector.extract_strided_slice %41 {offsets = [0, 128], sizes = [8, 128], strides = [1, 1]} : vector<8x384xf32> to vector<8x128xf32>
    %45 = arith.truncf %44 : vector<8x128xf32> to vector<8x128xbf16>
    %46 = vector.extract_strided_slice %41 {offsets = [0, 256], sizes = [8, 128], strides = [1, 1]} : vector<8x384xf32> to vector<8x128xf32>
    %47 = arith.truncf %46 : vector<8x128xf32> to vector<8x128xbf16>
    %48 = vector.extract_strided_slice %43 {offsets = [0, 0], sizes = [8, 64], strides = [1, 1]} : vector<8x128xbf16> to vector<8x64xbf16>
    %49 = vector.extract_strided_slice %45 {offsets = [0, 0], sizes = [8, 64], strides = [1, 1]} : vector<8x128xbf16> to vector<8x64xbf16>
    %50 = vector.extract_strided_slice %47 {offsets = [0, 0], sizes = [8, 64], strides = [1, 1]} : vector<8x128xbf16> to vector<8x64xbf16>
    %cst_16 = arith.constant dense<0.000000e+00> : vector<8x8xf32>
    %51 = tpu.matmul %48, %49, %cst_16 {dimension_numbers = #tpu.dot_dimension_numbers<[1], [1], [0], [0], [0, 0, 1, 0], [], []>} : vector<8x64xbf16>, vector<8x64xbf16>, vector<8x8xf32> -> vector<8x8xf32>
    %cst_17 = arith.constant 1.250000e-01 : f32
    %52 = vector.broadcast %cst_17 : f32 to vector<8x8xf32>
    %53 = arith.mulf %51, %52 : vector<8x8xf32>
    %cst_18 = arith.constant dense<0xFF800000> : vector<8xf32>
    %54 = vector.multi_reduction <maximumf>, %53, %cst_18 [1] : vector<8x8xf32> to vector<8xf32>
    %55 = vector.shape_cast %54 : vector<8xf32> to vector<8x1xf32>
    %56 = vector.broadcast %55 : vector<8x1xf32> to vector<8x8xf32>
    %57 = arith.subf %53, %56 : vector<8x8xf32>
    %58 = math.exp %57 : vector<8x8xf32>
    %cst_19 = arith.constant dense<0.000000e+00> : vector<8xf32>
    %59 = vector.multi_reduction <add>, %58, %cst_19 [1] : vector<8x8xf32> to vector<8xf32>
    %60 = vector.shape_cast %59 : vector<8xf32> to vector<8x1xf32>
    %61 = tpu.reciprocal %60 {approx = true} : vector<8x1xf32> -> vector<8x1xf32>
    %62 = vector.broadcast %61 : vector<8x1xf32> to vector<8x8xf32>
    %63 = arith.mulf %58, %62 : vector<8x8xf32>
    %64 = arith.truncf %63 : vector<8x8xf32> to vector<8x8xbf16>
    %cst_20 = arith.constant dense<0.000000e+00> : vector<8x64xf32>
    %65 = tpu.matmul %64, %50, %cst_20 {dimension_numbers = #tpu.dot_dimension_numbers<[1], [0], [0], [1], [0, 0, 1, 1], [], []>} : vector<8x8xbf16>, vector<8x64xbf16>, vector<8x64xf32> -> vector<8x64xf32>
    %66 = vector.extract_strided_slice %43 {offsets = [0, 64], sizes = [8, 64], strides = [1, 1]} : vector<8x128xbf16> to vector<8x64xbf16>
    %67 = vector.extract_strided_slice %45 {offsets = [0, 64], sizes = [8, 64], strides = [1, 1]} : vector<8x128xbf16> to vector<8x64xbf16>
    %68 = vector.extract_strided_slice %47 {offsets = [0, 64], sizes = [8, 64], strides = [1, 1]} : vector<8x128xbf16> to vector<8x64xbf16>
    %cst_21 = arith.constant dense<0.000000e+00> : vector<8x8xf32>
    %69 = tpu.matmul %66, %67, %cst_21 {dimension_numbers = #tpu.dot_dimension_numbers<[1], [1], [0], [0], [0, 0, 1, 0], [], []>} : vector<8x64xbf16>, vector<8x64xbf16>, vector<8x8xf32> -> vector<8x8xf32>
    %cst_22 = arith.constant 1.250000e-01 : f32
    %70 = vector.broadcast %cst_22 : f32 to vector<8x8xf32>
    %71 = arith.mulf %69, %70 : vector<8x8xf32>
    %cst_23 = arith.constant dense<0xFF800000> : vector<8xf32>
    %72 = vector.multi_reduction <maximumf>, %71, %cst_23 [1] : vector<8x8xf32> to vector<8xf32>
    %73 = vector.shape_cast %72 : vector<8xf32> to vector<8x1xf32>
    %74 = vector.broadcast %73 : vector<8x1xf32> to vector<8x8xf32>
    %75 = arith.subf %71, %74 : vector<8x8xf32>
    %76 = math.exp %75 : vector<8x8xf32>
    %cst_24 = arith.constant dense<0.000000e+00> : vector<8xf32>
    %77 = vector.multi_reduction <add>, %76, %cst_24 [1] : vector<8x8xf32> to vector<8xf32>
    %78 = vector.shape_cast %77 : vector<8xf32> to vector<8x1xf32>
    %79 = tpu.reciprocal %78 {approx = true} : vector<8x1xf32> -> vector<8x1xf32>
    %80 = vector.broadcast %79 : vector<8x1xf32> to vector<8x8xf32>
    %81 = arith.mulf %76, %80 : vector<8x8xf32>
    %82 = arith.truncf %81 : vector<8x8xf32> to vector<8x8xbf16>
    %cst_25 = arith.constant dense<0.000000e+00> : vector<8x64xf32>
    %83 = tpu.matmul %82, %68, %cst_25 {dimension_numbers = #tpu.dot_dimension_numbers<[1], [0], [0], [1], [0, 0, 1, 1], [], []>} : vector<8x8xbf16>, vector<8x64xbf16>, vector<8x64xf32> -> vector<8x64xf32>
    %84 = tpu.concatenate %65, %83 in 1 : vector<8x64xf32>, vector<8x64xf32> -> vector<8x128xf32>
    %c0_26 = arith.constant 0 : index
    %c0_27 = arith.constant 0 : index
    %c0_28 = arith.constant 0 : index
    %85 = vector.load %arg4[%c0_26, %c0_27, %c0_28] : memref<2x128x128xbf16, #tpu.memory_space<vmem>>, vector<1x128x128xbf16>
    %86 = vector.shape_cast %85 : vector<1x128x128xbf16> to vector<128x128xbf16>
    %87 = arith.truncf %84 : vector<8x128xf32> to vector<8x128xbf16>
    %cst_29 = arith.constant dense<0.000000e+00> : vector<8x128xf32>
    %88 = tpu.matmul %87, %86, %cst_29 {dimension_numbers = #tpu.dot_dimension_numbers<[1], [0], [0], [1], [0, 0, 1, 1], [], []>} : vector<8x128xbf16>, vector<128x128xbf16>, vector<8x128xf32> -> vector<8x128xf32>
    %89 = vector.broadcast %30 : vector<1x128xf32> to vector<8x128xf32>
    %90 = arith.addf %88, %89 : vector<8x128xf32>
    %91 = arith.addf %25, %90 : vector<8x128xf32>
    %cst_30 = arith.constant dense<0.000000e+00> : vector<8xf32>
    %92 = vector.multi_reduction <add>, %91, %cst_30 [1] : vector<8x128xf32> to vector<8xf32>
    %93 = vector.shape_cast %92 : vector<8xf32> to vector<8x1xf32>
    %cst_31 = arith.constant 1.280000e+02 : f32
    %94 = vector.broadcast %cst_31 : f32 to vector<8x1xf32>
    %95 = arith.divf %93, %94 : vector<8x1xf32>
    %96 = vector.broadcast %95 : vector<8x1xf32> to vector<8x128xf32>
    %97 = arith.subf %91, %96 : vector<8x128xf32>
    %98 = arith.mulf %97, %97 : vector<8x128xf32>
    %cst_32 = arith.constant dense<0.000000e+00> : vector<8xf32>
    %99 = vector.multi_reduction <add>, %98, %cst_32 [1] : vector<8x128xf32> to vector<8xf32>
    %100 = vector.shape_cast %99 : vector<8xf32> to vector<8x1xf32>
    %cst_33 = arith.constant 1.280000e+02 : f32
    %101 = vector.broadcast %cst_33 : f32 to vector<8x1xf32>
    %102 = arith.divf %100, %101 : vector<8x1xf32>
    %103 = vector.broadcast %95 : vector<8x1xf32> to vector<8x128xf32>
    %104 = arith.subf %91, %103 : vector<8x128xf32>
    %cst_34 = arith.constant 9.99999996E-13 : f32
    %105 = vector.broadcast %cst_34 : f32 to vector<8x1xf32>
    %106 = arith.addf %102, %105 : vector<8x1xf32>
    %107 = math.rsqrt %106 : vector<8x1xf32>
    %108 = vector.broadcast %107 : vector<8x1xf32> to vector<8x128xf32>
    %109 = arith.mulf %104, %108 : vector<8x128xf32>
    %110 = vector.broadcast %31 : vector<1x128xf32> to vector<8x128xf32>
    %111 = arith.mulf %109, %110 : vector<8x128xf32>
    %112 = vector.broadcast %32 : vector<1x128xf32> to vector<8x128xf32>
    %113 = arith.addf %111, %112 : vector<8x128xf32>
    %c0_35 = arith.constant 0 : index
    %c0_36 = arith.constant 0 : index
    %c0_37 = arith.constant 0 : index
    %114 = vector.load %arg5[%c0_35, %c0_36, %c0_37] : memref<2x128x256xbf16, #tpu.memory_space<vmem>>, vector<1x128x256xbf16>
    %115 = vector.shape_cast %114 : vector<1x128x256xbf16> to vector<128x256xbf16>
    %116 = arith.truncf %113 : vector<8x128xf32> to vector<8x128xbf16>
    %cst_38 = arith.constant dense<0.000000e+00> : vector<8x256xf32>
    %117 = tpu.matmul %116, %115, %cst_38 {dimension_numbers = #tpu.dot_dimension_numbers<[1], [0], [0], [1], [0, 0, 1, 1], [], []>} : vector<8x128xbf16>, vector<128x256xbf16>, vector<8x256xf32> -> vector<8x256xf32>
    %118 = vector.broadcast %29 : vector<1x256xf32> to vector<8x256xf32>
    %119 = arith.addf %117, %118 : vector<8x256xf32>
    %120 = arith.mulf %119, %119 : vector<8x256xf32>
    %121 = arith.mulf %119, %120 : vector<8x256xf32>
    %cst_39 = arith.constant 4.471500e-02 : f32
    %122 = vector.broadcast %cst_39 : f32 to vector<8x256xf32>
    %123 = arith.mulf %122, %121 : vector<8x256xf32>
    %124 = arith.addf %119, %123 : vector<8x256xf32>
    %cst_40 = arith.constant 0.797884583 : f32
    %125 = vector.broadcast %cst_40 : f32 to vector<8x256xf32>
    %126 = arith.mulf %125, %124 : vector<8x256xf32>
    %127 = math.tanh %126 : vector<8x256xf32>
    %cst_41 = arith.constant 1.000000e+00 : f32
    %128 = vector.broadcast %cst_41 : f32 to vector<8x256xf32>
    %129 = arith.addf %128, %127 : vector<8x256xf32>
    %cst_42 = arith.constant 5.000000e-01 : f32
    %130 = vector.broadcast %cst_42 : f32 to vector<8x256xf32>
    %131 = arith.mulf %130, %129 : vector<8x256xf32>
    %132 = arith.mulf %119, %131 : vector<8x256xf32>
    %c0_43 = arith.constant 0 : index
    %c0_44 = arith.constant 0 : index
    %c0_45 = arith.constant 0 : index
    %133 = vector.load %arg6[%c0_43, %c0_44, %c0_45] : memref<2x256x128xbf16, #tpu.memory_space<vmem>>, vector<1x256x128xbf16>
    %134 = vector.shape_cast %133 : vector<1x256x128xbf16> to vector<256x128xbf16>
    %135 = arith.truncf %132 : vector<8x256xf32> to vector<8x256xbf16>
    %cst_46 = arith.constant dense<0.000000e+00> : vector<8x128xf32>
    %136 = tpu.matmul %135, %134, %cst_46 {dimension_numbers = #tpu.dot_dimension_numbers<[1], [0], [0], [1], [0, 0, 1, 1], [], []>} : vector<8x256xbf16>, vector<256x128xbf16>, vector<8x128xf32> -> vector<8x128xf32>
    %137 = vector.broadcast %33 : vector<1x128xf32> to vector<8x128xf32>
    %138 = arith.addf %136, %137 : vector<8x128xf32>
    %139 = arith.addf %113, %138 : vector<8x128xf32>
    %cst_47 = arith.constant dense<0.000000e+00> : vector<8xf32>
    %140 = vector.multi_reduction <add>, %139, %cst_47 [1] : vector<8x128xf32> to vector<8xf32>
    %141 = vector.shape_cast %140 : vector<8xf32> to vector<8x1xf32>
    %cst_48 = arith.constant 1.280000e+02 : f32
    %142 = vector.broadcast %cst_48 : f32 to vector<8x1xf32>
    %143 = arith.divf %141, %142 : vector<8x1xf32>
    %144 = vector.broadcast %143 : vector<8x1xf32> to vector<8x128xf32>
    %145 = arith.subf %139, %144 : vector<8x128xf32>
    %146 = arith.mulf %145, %145 : vector<8x128xf32>
    %cst_49 = arith.constant dense<0.000000e+00> : vector<8xf32>
    %147 = vector.multi_reduction <add>, %146, %cst_49 [1] : vector<8x128xf32> to vector<8xf32>
    %148 = vector.shape_cast %147 : vector<8xf32> to vector<8x1xf32>
    %cst_50 = arith.constant 1.280000e+02 : f32
    %149 = vector.broadcast %cst_50 : f32 to vector<8x1xf32>
    %150 = arith.divf %148, %149 : vector<8x1xf32>
    %151 = vector.broadcast %143 : vector<8x1xf32> to vector<8x128xf32>
    %152 = arith.subf %139, %151 : vector<8x128xf32>
    %cst_51 = arith.constant 9.99999996E-13 : f32
    %153 = vector.broadcast %cst_51 : f32 to vector<8x1xf32>
    %154 = arith.addf %150, %153 : vector<8x1xf32>
    %155 = math.rsqrt %154 : vector<8x1xf32>
    %156 = vector.broadcast %155 : vector<8x1xf32> to vector<8x128xf32>
    %157 = arith.mulf %152, %156 : vector<8x128xf32>
    %158 = vector.broadcast %34 : vector<1x128xf32> to vector<8x128xf32>
    %159 = arith.mulf %157, %158 : vector<8x128xf32>
    %160 = vector.broadcast %35 : vector<1x128xf32> to vector<8x128xf32>
    %161 = arith.addf %159, %160 : vector<8x128xf32>
    %c1_52 = arith.constant 1 : index
    %c0_53 = arith.constant 0 : index
    %c0_54 = arith.constant 0 : index
    %162 = vector.load %arg7[%c1_52, %c0_53, %c0_54] : memref<2x8x384xf32, #tpu.memory_space<vmem>>, vector<1x8x384xf32>
    %163 = vector.shape_cast %162 : vector<1x8x384xf32> to vector<8x384xf32>
    %164 = vector.extract_strided_slice %163 {offsets = [0, 0], sizes = [1, 384], strides = [1, 1]} : vector<8x384xf32> to vector<1x384xf32>
    %165 = vector.extract_strided_slice %163 {offsets = [1, 0], sizes = [1, 256], strides = [1, 1]} : vector<8x384xf32> to vector<1x256xf32>
    %166 = vector.extract_strided_slice %163 {offsets = [2, 0], sizes = [1, 128], strides = [1, 1]} : vector<8x384xf32> to vector<1x128xf32>
    %167 = vector.extract_strided_slice %163 {offsets = [2, 128], sizes = [1, 128], strides = [1, 1]} : vector<8x384xf32> to vector<1x128xf32>
    %168 = vector.extract_strided_slice %163 {offsets = [2, 256], sizes = [1, 128], strides = [1, 1]} : vector<8x384xf32> to vector<1x128xf32>
    %169 = vector.extract_strided_slice %163 {offsets = [3, 0], sizes = [1, 128], strides = [1, 1]} : vector<8x384xf32> to vector<1x128xf32>
    %170 = vector.extract_strided_slice %163 {offsets = [3, 128], sizes = [1, 128], strides = [1, 1]} : vector<8x384xf32> to vector<1x128xf32>
    %171 = vector.extract_strided_slice %163 {offsets = [3, 256], sizes = [1, 128], strides = [1, 1]} : vector<8x384xf32> to vector<1x128xf32>
    %c1_55 = arith.constant 1 : index
    %c0_56 = arith.constant 0 : index
    %c0_57 = arith.constant 0 : index
    %172 = vector.load %arg3[%c1_55, %c0_56, %c0_57] : memref<2x128x384xbf16, #tpu.memory_space<vmem>>, vector<1x128x384xbf16>
    %173 = vector.shape_cast %172 : vector<1x128x384xbf16> to vector<128x384xbf16>
    %174 = arith.truncf %161 : vector<8x128xf32> to vector<8x128xbf16>
    %cst_58 = arith.constant dense<0.000000e+00> : vector<8x384xf32>
    %175 = tpu.matmul %174, %173, %cst_58 {dimension_numbers = #tpu.dot_dimension_numbers<[1], [0], [0], [1], [0, 0, 1, 1], [], []>} : vector<8x128xbf16>, vector<128x384xbf16>, vector<8x384xf32> -> vector<8x384xf32>
    %176 = vector.broadcast %164 : vector<1x384xf32> to vector<8x384xf32>
    %177 = arith.addf %175, %176 : vector<8x384xf32>
    %178 = vector.extract_strided_slice %177 {offsets = [0, 0], sizes = [8, 128], strides = [1, 1]} : vector<8x384xf32> to vector<8x128xf32>
    %179 = arith.truncf %178 : vector<8x128xf32> to vector<8x128xbf16>
    %180 = vector.extract_strided_slice %177 {offsets = [0, 128], sizes = [8, 128], strides = [1, 1]} : vector<8x384xf32> to vector<8x128xf32>
    %181 = arith.truncf %180 : vector<8x128xf32> to vector<8x128xbf16>
    %182 = vector.extract_strided_slice %177 {offsets = [0, 256], sizes = [8, 128], strides = [1, 1]} : vector<8x384xf32> to vector<8x128xf32>
    %183 = arith.truncf %182 : vector<8x128xf32> to vector<8x128xbf16>
    %184 = vector.extract_strided_slice %179 {offsets = [0, 0], sizes = [8, 64], strides = [1, 1]} : vector<8x128xbf16> to vector<8x64xbf16>
    %185 = vector.extract_strided_slice %181 {offsets = [0, 0], sizes = [8, 64], strides = [1, 1]} : vector<8x128xbf16> to vector<8x64xbf16>
    %186 = vector.extract_strided_slice %183 {offsets = [0, 0], sizes = [8, 64], strides = [1, 1]} : vector<8x128xbf16> to vector<8x64xbf16>
    %cst_59 = arith.constant dense<0.000000e+00> : vector<8x8xf32>
    %187 = tpu.matmul %184, %185, %cst_59 {dimension_numbers = #tpu.dot_dimension_numbers<[1], [1], [0], [0], [0, 0, 1, 0], [], []>} : vector<8x64xbf16>, vector<8x64xbf16>, vector<8x8xf32> -> vector<8x8xf32>
    %cst_60 = arith.constant 1.250000e-01 : f32
    %188 = vector.broadcast %cst_60 : f32 to vector<8x8xf32>
    %189 = arith.mulf %187, %188 : vector<8x8xf32>
    %cst_61 = arith.constant dense<0xFF800000> : vector<8xf32>
    %190 = vector.multi_reduction <maximumf>, %189, %cst_61 [1] : vector<8x8xf32> to vector<8xf32>
    %191 = vector.shape_cast %190 : vector<8xf32> to vector<8x1xf32>
    %192 = vector.broadcast %191 : vector<8x1xf32> to vector<8x8xf32>
    %193 = arith.subf %189, %192 : vector<8x8xf32>
    %194 = math.exp %193 : vector<8x8xf32>
    %cst_62 = arith.constant dense<0.000000e+00> : vector<8xf32>
    %195 = vector.multi_reduction <add>, %194, %cst_62 [1] : vector<8x8xf32> to vector<8xf32>
    %196 = vector.shape_cast %195 : vector<8xf32> to vector<8x1xf32>
    %197 = tpu.reciprocal %196 {approx = true} : vector<8x1xf32> -> vector<8x1xf32>
    %198 = vector.broadcast %197 : vector<8x1xf32> to vector<8x8xf32>
    %199 = arith.mulf %194, %198 : vector<8x8xf32>
    %200 = arith.truncf %199 : vector<8x8xf32> to vector<8x8xbf16>
    %cst_63 = arith.constant dense<0.000000e+00> : vector<8x64xf32>
    %201 = tpu.matmul %200, %186, %cst_63 {dimension_numbers = #tpu.dot_dimension_numbers<[1], [0], [0], [1], [0, 0, 1, 1], [], []>} : vector<8x8xbf16>, vector<8x64xbf16>, vector<8x64xf32> -> vector<8x64xf32>
    %202 = vector.extract_strided_slice %179 {offsets = [0, 64], sizes = [8, 64], strides = [1, 1]} : vector<8x128xbf16> to vector<8x64xbf16>
    %203 = vector.extract_strided_slice %181 {offsets = [0, 64], sizes = [8, 64], strides = [1, 1]} : vector<8x128xbf16> to vector<8x64xbf16>
    %204 = vector.extract_strided_slice %183 {offsets = [0, 64], sizes = [8, 64], strides = [1, 1]} : vector<8x128xbf16> to vector<8x64xbf16>
    %cst_64 = arith.constant dense<0.000000e+00> : vector<8x8xf32>
    %205 = tpu.matmul %202, %203, %cst_64 {dimension_numbers = #tpu.dot_dimension_numbers<[1], [1], [0], [0], [0, 0, 1, 0], [], []>} : vector<8x64xbf16>, vector<8x64xbf16>, vector<8x8xf32> -> vector<8x8xf32>
    %cst_65 = arith.constant 1.250000e-01 : f32
    %206 = vector.broadcast %cst_65 : f32 to vector<8x8xf32>
    %207 = arith.mulf %205, %206 : vector<8x8xf32>
    %cst_66 = arith.constant dense<0xFF800000> : vector<8xf32>
    %208 = vector.multi_reduction <maximumf>, %207, %cst_66 [1] : vector<8x8xf32> to vector<8xf32>
    %209 = vector.shape_cast %208 : vector<8xf32> to vector<8x1xf32>
    %210 = vector.broadcast %209 : vector<8x1xf32> to vector<8x8xf32>
    %211 = arith.subf %207, %210 : vector<8x8xf32>
    %212 = math.exp %211 : vector<8x8xf32>
    %cst_67 = arith.constant dense<0.000000e+00> : vector<8xf32>
    %213 = vector.multi_reduction <add>, %212, %cst_67 [1] : vector<8x8xf32> to vector<8xf32>
    %214 = vector.shape_cast %213 : vector<8xf32> to vector<8x1xf32>
    %215 = tpu.reciprocal %214 {approx = true} : vector<8x1xf32> -> vector<8x1xf32>
    %216 = vector.broadcast %215 : vector<8x1xf32> to vector<8x8xf32>
    %217 = arith.mulf %212, %216 : vector<8x8xf32>
    %218 = arith.truncf %217 : vector<8x8xf32> to vector<8x8xbf16>
    %cst_68 = arith.constant dense<0.000000e+00> : vector<8x64xf32>
    %219 = tpu.matmul %218, %204, %cst_68 {dimension_numbers = #tpu.dot_dimension_numbers<[1], [0], [0], [1], [0, 0, 1, 1], [], []>} : vector<8x8xbf16>, vector<8x64xbf16>, vector<8x64xf32> -> vector<8x64xf32>
    %220 = tpu.concatenate %201, %219 in 1 : vector<8x64xf32>, vector<8x64xf32> -> vector<8x128xf32>
    %c1_69 = arith.constant 1 : index
    %c0_70 = arith.constant 0 : index
    %c0_71 = arith.constant 0 : index
    %221 = vector.load %arg4[%c1_69, %c0_70, %c0_71] : memref<2x128x128xbf16, #tpu.memory_space<vmem>>, vector<1x128x128xbf16>
    %222 = vector.shape_cast %221 : vector<1x128x128xbf16> to vector<128x128xbf16>
    %223 = arith.truncf %220 : vector<8x128xf32> to vector<8x128xbf16>
    %cst_72 = arith.constant dense<0.000000e+00> : vector<8x128xf32>
    %224 = tpu.matmul %223, %222, %cst_72 {dimension_numbers = #tpu.dot_dimension_numbers<[1], [0], [0], [1], [0, 0, 1, 1], [], []>} : vector<8x128xbf16>, vector<128x128xbf16>, vector<8x128xf32> -> vector<8x128xf32>
    %225 = vector.broadcast %166 : vector<1x128xf32> to vector<8x128xf32>
    %226 = arith.addf %224, %225 : vector<8x128xf32>
    %227 = arith.addf %161, %226 : vector<8x128xf32>
    %cst_73 = arith.constant dense<0.000000e+00> : vector<8xf32>
    %228 = vector.multi_reduction <add>, %227, %cst_73 [1] : vector<8x128xf32> to vector<8xf32>
    %229 = vector.shape_cast %228 : vector<8xf32> to vector<8x1xf32>
    %cst_74 = arith.constant 1.280000e+02 : f32
    %230 = vector.broadcast %cst_74 : f32 to vector<8x1xf32>
    %231 = arith.divf %229, %230 : vector<8x1xf32>
    %232 = vector.broadcast %231 : vector<8x1xf32> to vector<8x128xf32>
    %233 = arith.subf %227, %232 : vector<8x128xf32>
    %234 = arith.mulf %233, %233 : vector<8x128xf32>
    %cst_75 = arith.constant dense<0.000000e+00> : vector<8xf32>
    %235 = vector.multi_reduction <add>, %234, %cst_75 [1] : vector<8x128xf32> to vector<8xf32>
    %236 = vector.shape_cast %235 : vector<8xf32> to vector<8x1xf32>
    %cst_76 = arith.constant 1.280000e+02 : f32
    %237 = vector.broadcast %cst_76 : f32 to vector<8x1xf32>
    %238 = arith.divf %236, %237 : vector<8x1xf32>
    %239 = vector.broadcast %231 : vector<8x1xf32> to vector<8x128xf32>
    %240 = arith.subf %227, %239 : vector<8x128xf32>
    %cst_77 = arith.constant 9.99999996E-13 : f32
    %241 = vector.broadcast %cst_77 : f32 to vector<8x1xf32>
    %242 = arith.addf %238, %241 : vector<8x1xf32>
    %243 = math.rsqrt %242 : vector<8x1xf32>
    %244 = vector.broadcast %243 : vector<8x1xf32> to vector<8x128xf32>
    %245 = arith.mulf %240, %244 : vector<8x128xf32>
    %246 = vector.broadcast %167 : vector<1x128xf32> to vector<8x128xf32>
    %247 = arith.mulf %245, %246 : vector<8x128xf32>
    %248 = vector.broadcast %168 : vector<1x128xf32> to vector<8x128xf32>
    %249 = arith.addf %247, %248 : vector<8x128xf32>
    %c1_78 = arith.constant 1 : index
    %c0_79 = arith.constant 0 : index
    %c0_80 = arith.constant 0 : index
    %250 = vector.load %arg5[%c1_78, %c0_79, %c0_80] : memref<2x128x256xbf16, #tpu.memory_space<vmem>>, vector<1x128x256xbf16>
    %251 = vector.shape_cast %250 : vector<1x128x256xbf16> to vector<128x256xbf16>
    %252 = arith.truncf %249 : vector<8x128xf32> to vector<8x128xbf16>
    %cst_81 = arith.constant dense<0.000000e+00> : vector<8x256xf32>
    %253 = tpu.matmul %252, %251, %cst_81 {dimension_numbers = #tpu.dot_dimension_numbers<[1], [0], [0], [1], [0, 0, 1, 1], [], []>} : vector<8x128xbf16>, vector<128x256xbf16>, vector<8x256xf32> -> vector<8x256xf32>
    %254 = vector.broadcast %165 : vector<1x256xf32> to vector<8x256xf32>
    %255 = arith.addf %253, %254 : vector<8x256xf32>
    %256 = arith.mulf %255, %255 : vector<8x256xf32>
    %257 = arith.mulf %255, %256 : vector<8x256xf32>
    %cst_82 = arith.constant 4.471500e-02 : f32
    %258 = vector.broadcast %cst_82 : f32 to vector<8x256xf32>
    %259 = arith.mulf %258, %257 : vector<8x256xf32>
    %260 = arith.addf %255, %259 : vector<8x256xf32>
    %cst_83 = arith.constant 0.797884583 : f32
    %261 = vector.broadcast %cst_83 : f32 to vector<8x256xf32>
    %262 = arith.mulf %261, %260 : vector<8x256xf32>
    %263 = math.tanh %262 : vector<8x256xf32>
    %cst_84 = arith.constant 1.000000e+00 : f32
    %264 = vector.broadcast %cst_84 : f32 to vector<8x256xf32>
    %265 = arith.addf %264, %263 : vector<8x256xf32>
    %cst_85 = arith.constant 5.000000e-01 : f32
    %266 = vector.broadcast %cst_85 : f32 to vector<8x256xf32>
    %267 = arith.mulf %266, %265 : vector<8x256xf32>
    %268 = arith.mulf %255, %267 : vector<8x256xf32>
    %c1_86 = arith.constant 1 : index
    %c0_87 = arith.constant 0 : index
    %c0_88 = arith.constant 0 : index
    %269 = vector.load %arg6[%c1_86, %c0_87, %c0_88] : memref<2x256x128xbf16, #tpu.memory_space<vmem>>, vector<1x256x128xbf16>
    %270 = vector.shape_cast %269 : vector<1x256x128xbf16> to vector<256x128xbf16>
    %271 = arith.truncf %268 : vector<8x256xf32> to vector<8x256xbf16>
    %cst_89 = arith.constant dense<0.000000e+00> : vector<8x128xf32>
    %272 = tpu.matmul %271, %270, %cst_89 {dimension_numbers = #tpu.dot_dimension_numbers<[1], [0], [0], [1], [0, 0, 1, 1], [], []>} : vector<8x256xbf16>, vector<256x128xbf16>, vector<8x128xf32> -> vector<8x128xf32>
    %273 = vector.broadcast %169 : vector<1x128xf32> to vector<8x128xf32>
    %274 = arith.addf %272, %273 : vector<8x128xf32>
    %275 = arith.addf %249, %274 : vector<8x128xf32>
    %cst_90 = arith.constant dense<0.000000e+00> : vector<8xf32>
    %276 = vector.multi_reduction <add>, %275, %cst_90 [1] : vector<8x128xf32> to vector<8xf32>
    %277 = vector.shape_cast %276 : vector<8xf32> to vector<8x1xf32>
    %cst_91 = arith.constant 1.280000e+02 : f32
    %278 = vector.broadcast %cst_91 : f32 to vector<8x1xf32>
    %279 = arith.divf %277, %278 : vector<8x1xf32>
    %280 = vector.broadcast %279 : vector<8x1xf32> to vector<8x128xf32>
    %281 = arith.subf %275, %280 : vector<8x128xf32>
    %282 = arith.mulf %281, %281 : vector<8x128xf32>
    %cst_92 = arith.constant dense<0.000000e+00> : vector<8xf32>
    %283 = vector.multi_reduction <add>, %282, %cst_92 [1] : vector<8x128xf32> to vector<8xf32>
    %284 = vector.shape_cast %283 : vector<8xf32> to vector<8x1xf32>
    %cst_93 = arith.constant 1.280000e+02 : f32
    %285 = vector.broadcast %cst_93 : f32 to vector<8x1xf32>
    %286 = arith.divf %284, %285 : vector<8x1xf32>
    %287 = vector.broadcast %279 : vector<8x1xf32> to vector<8x128xf32>
    %288 = arith.subf %275, %287 : vector<8x128xf32>
    %cst_94 = arith.constant 9.99999996E-13 : f32
    %289 = vector.broadcast %cst_94 : f32 to vector<8x1xf32>
    %290 = arith.addf %286, %289 : vector<8x1xf32>
    %291 = math.rsqrt %290 : vector<8x1xf32>
    %292 = vector.broadcast %291 : vector<8x1xf32> to vector<8x128xf32>
    %293 = arith.mulf %288, %292 : vector<8x128xf32>
    %294 = vector.broadcast %170 : vector<1x128xf32> to vector<8x128xf32>
    %295 = arith.mulf %293, %294 : vector<8x128xf32>
    %296 = vector.broadcast %171 : vector<1x128xf32> to vector<8x128xf32>
    %297 = arith.addf %295, %296 : vector<8x128xf32>
    %c0_95 = arith.constant 0 : index
    %c0_96 = arith.constant 0 : index
    %298 = vector.load %arg8[%c0_95, %c0_96] : memref<128x128xbf16, #tpu.memory_space<vmem>>, vector<128x128xbf16>
    %299 = arith.truncf %297 : vector<8x128xf32> to vector<8x128xbf16>
    %cst_97 = arith.constant dense<0.000000e+00> : vector<8x128xf32>
    %300 = tpu.matmul %299, %298, %cst_97 {dimension_numbers = #tpu.dot_dimension_numbers<[1], [0], [0], [1], [0, 0, 1, 1], [], []>} : vector<8x128xbf16>, vector<128x128xbf16>, vector<8x128xf32> -> vector<8x128xf32>
    %301 = vector.broadcast %2 : vector<1x128xf32> to vector<8x128xf32>
    %302 = arith.addf %300, %301 : vector<8x128xf32>
    %c0_98 = arith.constant 0 : index
    %c0_99 = arith.constant 0 : index
    %303 = vector.load %arg9[%c0_98, %c0_99] : memref<8x128xf32, #tpu.memory_space<vmem>>, vector<8x128xf32>
    tpu.vector_store %arg9[%c0_98, %c0_99], %302 {strides = array<i32>} : memref<8x128xf32, #tpu.memory_space<vmem>>, vector<8x128xf32>,
    return
  }
  func.func @transform_0(%arg0: i32) -> (i32, i32) {
    %c0_i32 = arith.constant 0 : i32
    %c0_i32_0 = arith.constant 0 : i32
    return %arg0, %c0_i32 : i32, i32
  }
  func.func @transform_1(%arg0: i32) -> (i32, i32) {
    %c0_i32 = arith.constant 0 : i32
    %c0_i32_0 = arith.constant 0 : i32
    %c0_i32_1 = arith.constant 0 : i32
    return %c0_i32, %c0_i32_0 : i32, i32
  }
  func.func @transform_2(%arg0: i32) -> (i32, i32, i32) {
    %c0_i32 = arith.constant 0 : i32
    %c0_i32_0 = arith.constant 0 : i32
    %c0_i32_1 = arith.constant 0 : i32
    %c0_i32_2 = arith.constant 0 : i32
    return %c0_i32, %c0_i32_0, %c0_i32_1 : i32, i32, i32
  }
  func.func @transform_3(%arg0: i32) -> (i32, i32, i32) {
    %c0_i32 = arith.constant 0 : i32
    %c0_i32_0 = arith.constant 0 : i32
    %c0_i32_1 = arith.constant 0 : i32
    %c0_i32_2 = arith.constant 0 : i32
    return %c0_i32, %c0_i32_0, %c0_i32_1 : i32, i32, i32
  }
  func.func @transform_4(%arg0: i32) -> (i32, i32, i32) {
    %c0_i32 = arith.constant 0 : i32
    %c0_i32_0 = arith.constant 0 : i32
    %c0_i32_1 = arith.constant 0 : i32
    %c0_i32_2 = arith.constant 0 : i32
    return %c0_i32, %c0_i32_0, %c0_i32_1 : i32, i32, i32
  }
  func.func @transform_5(%arg0: i32) -> (i32, i32, i32) {
    %c0_i32 = arith.constant 0 : i32
    %c0_i32_0 = arith.constant 0 : i32
    %c0_i32_1 = arith.constant 0 : i32
    %c0_i32_2 = arith.constant 0 : i32
    return %c0_i32, %c0_i32_0, %c0_i32_1 : i32, i32, i32
  }
  func.func @transform_6(%arg0: i32) -> (i32, i32, i32) {
    %c0_i32 = arith.constant 0 : i32
    %c0_i32_0 = arith.constant 0 : i32
    %c0_i32_1 = arith.constant 0 : i32
    %c0_i32_2 = arith.constant 0 : i32
    return %c0_i32, %c0_i32_0, %c0_i32_1 : i32, i32, i32
  }
  func.func @transform_7(%arg0: i32) -> (i32, i32) {
    %c0_i32 = arith.constant 0 : i32
    %c0_i32_0 = arith.constant 0 : i32
    %c0_i32_1 = arith.constant 0 : i32
    return %c0_i32, %c0_i32_0 : i32, i32
  }
  func.func @transform_8(%arg0: i32) -> (i32, i32) {
    %c0_i32 = arith.constant 0 : i32
    %c0_i32_0 = arith.constant 0 : i32
    return %arg0, %c0_i32 : i32, i32
  }
}

</mosaic_0001>

<bundles_post_ra>
// kernel: tpu_custom_call.1
= control target key start
LH: loop header
LB: loop body
LE: loop exit
PB: predicated region body
PF: predicated region fallthrough
CT: control target
= control target key end

     0   :  { %13 = vsyncpa [#allocation3], 0  ;;  %s4344_s0 = inlined_call_operand.hbm [shape: f32[16,128], index: 0, kind: input, shape index: {}]   ;;  %s4345_s1 = inlined_call_operand.hbm [shape: f32[8,128], index: 1, kind: input, shape index: {}]   ;;  %s4346_s2 = inlined_call_operand.hbm [shape: bf16[2,128,384], index: 2, kind: input, shape index: {}]   ;;  %s4347_s3 = inlined_call_operand.hbm [shape: bf16[2,128,128], index: 3, kind: input, shape index: {}]   ;;  %s4348_s4 = inlined_call_operand.hbm [shape: bf16[2,128,256], index: 4, kind: input, shape index: {}]   ;;  %s4349_s5 = inlined_call_operand.hbm [shape: bf16[2,256,128], index: 5, kind: input, shape index: {}]   ;;  %s4350_s6 = inlined_call_operand.hbm [shape: f32[2,8,384], index: 6, kind: input, shape index: {}]   ;;  %s4351_s7 = inlined_call_operand.hbm [shape: bf16[128,128], index: 7, kind: input, shape index: {}]   ;;  %s4352_s8 = inlined_call_operand.hbm [shape: f32[16,128], index: 8, kind: output, shape index: {}]  }
   0x1   :  { %15 = vsyncpa [#allocation3 + $0x1], 0 }
   0x2   :  { %16 = vsyncpa [#allocation6], 0 }
   0x3   :  { %17 = vsyncpa [#allocation9], 0 }
   0x4   :  { %18 = vsyncpa [#allocation12], 0 }
   0x5   :  { %19 = vsyncpa [#allocation15], 0 }
   0x6   :  { %20 = vsyncpa [#allocation4], 0 }
   0x7   :  { %22 = vsyncpa [#allocation4 + $0x1], 0  ;;  %s3800_s27 = smov 0   ;;  %s3802_s28 = smov 0  }
   0x8   :  { %s3804_s29 = smov 0   ;;  %s3806_s30 = smov 0  }
   0x9 LB: > { %s3734_s9 = smov [#allocation5]   ;;  %s3821_s11 = sadd.s32 4294967295, %s3732_s30   ;;  %s3732_s30 = sphi %s3806_s30, %s4383_s30   ;;  %s3728_s29 = sphi %s3804_s29, %s4382_s29   ;;  %s3724_s28 = sphi %s3802_s28, %s4381_s28   ;;  %s3720_s27 = sphi %s3800_s27, %s4380_s27  }
   0xa   : > { %s245_s10 = sshll.u32 %s3734_s9, 4  ;;  %p2668_p0 = scmp.ge.s32.totalorder %s3732_s30, 1  ;;  %s246_s10 = int_to_ptr.vmem [resolvable:$true] %s245_s10 }
   0xb   : > { %p4353_p1 = scmp.eq.s32.totalorder %s3821_s11, 0  ;;  %p232_p2 = scmp.lt.s32.totalorder %s3732_s30, 3 }
   0xc   : > { %s3735_s13 = smov [#allocation8]   ;;  %s3736_s16 = smov [#allocation11]  }
   0xd   : > { %p3826_p3 = pnand %p2668_p0, %p232_p2  ;;  %s268_s14 = sshll.u32 %s3735_s13, 4  ;;  %s3833_s14 = int_to_ptr.vmem [resolvable:$true] %s268_s14 }
   0xe   : > { %s294_s17 = sshll.u32 %s3736_s16, 4  ;;  %s3424_s20 = scalar_lea.hbm %s4345_s1, 128  ;;  %s3841_s17 = int_to_ptr.vmem [resolvable:$true] %s294_s17 }
   0xf   : > { %s4358_s12 = scalar_select %p3826_p3, 1, 0 }
  0x10   : > { %p3125_p5 = pneg %p3826_p3  ;;  %p3425_p7 = scmp.ne.s32.totalorder %s4345_s1, %s3424_s20 }
  0x11   : > { %p3431_p11 = scmp.lt.u32.totalorder %s3424_s20, %s4345_s1 }
  0x12   : > { %p3837_p6 = pnand %p3125_p5, %p4353_p1 }
  0x14   : > { %p3851_p8 = pneg %p3837_p6 }
  0x16   : > { %p3427_p9 = pnand %p3851_p8, %p3425_p7 }
  0x18   : > { %p3428_p10 = pneg %p3427_p9 }
  0x1a   : > { %p3433_p12 = pnand %p3431_p11, %p3428_p10 }
  0x1c   : > { %3436 = shalt.err (!%p3433_p12)
}
  0x1d   : > { %s3437_s26 = scalar_lea.vmem %s246_s10, 128  ;;  %p3445_p5 = scmp.lt.s32.totalorder %s246_s10, %s246_s10 }
  0x1e   : > { %p3438_p13 = scmp.ne.s32.totalorder %s246_s10, %s3437_s26  ;;  %p3446_p4 = scmp.lt.s32.totalorder %s3437_s26, %s3437_s26 }
  0x20   : > { %p3440_p0 = pnand %p3438_p13, %p3851_p8  ;;  %p3447_p1 = por %p3446_p4, %p3445_p5 }
  0x22   : > { %p3441_p2 = pneg %p3440_p0 }
  0x24   : > { %p3448_p3 = pnand %p3447_p1, %p3441_p2 }
  0x26   : > { %3451 = shalt.err (!%p3448_p3)
}
  0x27   : > { %3128 = dma.hbm_to_vmem [thread:$0]  (!%p3837_p6), %s4345_s1, 128, %s246_s10, [#allocation6]  }
  0x28   : > { %s3452_s19 = scalar_lea.hbm %s4347_s3, 2048 }
  0x29   : > { %p3453_p7 = scmp.ne.s32.totalorder %s4347_s3, %s3452_s19  ;;  %p3459_p1 = scmp.lt.u32.totalorder %s3452_s19, %s4347_s3 }
  0x2b   : > { %p3455_p9 = pnand %p3453_p7, %p3851_p8 }
  0x2d   : > { %p3456_p4 = pneg %p3455_p9 }
  0x2f   : > { %p3461_p3 = pnand %p3459_p1, %p3456_p4 }
  0x31   : > { %3464 = shalt.err (!%p3461_p3)
}
  0x32   : > { %s3465_s10 = scalar_lea.vmem %s3833_s14, 2048  ;;  %p3473_p13 = scmp.lt.s32.totalorder %s3833_s14, %s3833_s14 }
  0x33   : > { %p3466_p10 = scmp.ne.s32.totalorder %s3833_s14, %s3465_s10  ;;  %p3474_p0 = scmp.lt.s32.totalorder %s3465_s10, %s3465_s10 }
  0x35   : > { %p3468_p11 = pnand %p3466_p10, %p3851_p8  ;;  %p3475_p2 = por %p3474_p0, %p3473_p13 }
  0x37   : > { %p3469_p12 = pneg %p3468_p11 }
  0x39   : > { %p3476_p5 = pnand %p3475_p2, %p3469_p12 }
  0x3b   : > { %3479 = shalt.err (!%p3476_p5)
}
  0x3c   : > { %s4355_s25 = smov 64   ;;  %s4356_s26 = smov 4  }
  0x3d   : > { %3134 = dma.hbm_to_vmem [thread:$0]  (!%p3837_p6), %s4347_s3, 2048, %s3833_s14, [#allocation9], %s4355_s25, %s4355_s25, %s4356_s26  }
  0x3e   : > { %s3480_s19 = scalar_lea.hbm %s4349_s5, 4096 }
  0x3f   : > { %p3481_p7 = scmp.ne.s32.totalorder %s4349_s5, %s3480_s19  ;;  %p3487_p1 = scmp.lt.u32.totalorder %s3480_s19, %s4349_s5 }
  0x41   : > { %p3483_p9 = pnand %p3481_p7, %p3851_p8 }
  0x43   : > { %p3484_p4 = pneg %p3483_p9 }
  0x45   : > { %p3489_p3 = pnand %p3487_p1, %p3484_p4 }
  0x47   : > { %3492 = shalt.err (!%p3489_p3)
}
  0x48   : > { %s3493_s14 = scalar_lea.vmem %s3841_s17, 4096  ;;  %p3501_p13 = scmp.lt.s32.totalorder %s3841_s17, %s3841_s17 }
  0x49   : > { %p3494_p10 = scmp.ne.s32.totalorder %s3841_s17, %s3493_s14  ;;  %p3502_p0 = scmp.lt.s32.totalorder %s3493_s14, %s3493_s14 }
  0x4b   : > { %p3496_p11 = pnand %p3494_p10, %p3851_p8  ;;  %p3503_p2 = por %p3502_p0, %p3501_p13 }
  0x4d   : > { %p3497_p12 = pneg %p3496_p11 }
  0x4f   : > { %p3504_p5 = pnand %p3503_p2, %p3497_p12 }
  0x51   : > { %3507 = shalt.err (!%p3504_p5)
}
  0x52   : > { %3140 = dma.hbm_to_vmem [thread:$0]  (!%p3837_p6), %s4349_s5, 4096, %s3841_s17, [#allocation12], %s4355_s25, %s4355_s25, %s4356_s26  }
  0x53   : > { %s3739_s13 = smov [#allocation7]   ;;  %s3508_s20 = scalar_lea.hbm %s4346_s2, 6144 }
  0x54   : > { %s255_s16 = sshll.u32 %s3739_s13, 4  ;;  %p3509_p7 = scmp.ne.s32.totalorder %s4346_s2, %s3508_s20  ;;  %s256_s16 = int_to_ptr.vmem [resolvable:$true] %s255_s16 }
  0x55   : > { %p3515_p1 = scmp.lt.u32.totalorder %s3508_s20, %s4346_s2 }
  0x56   : > { %p3511_p9 = pnand %p3509_p7, %p3851_p8 }
  0x58   : > { %p3512_p4 = pneg %p3511_p9 }
  0x5a   : > { %p3517_p3 = pnand %p3515_p1, %p3512_p4 }
  0x5c   : > { %3520 = shalt.err (!%p3517_p3)
}
  0x5d   : > { %s3521_s17 = scalar_lea.vmem %s256_s16, 6144  ;;  %p3529_p13 = scmp.lt.s32.totalorder %s256_s16, %s256_s16 }
  0x5e   : > { %p3522_p10 = scmp.ne.s32.totalorder %s256_s16, %s3521_s17  ;;  %p3530_p0 = scmp.lt.s32.totalorder %s3521_s17, %s3521_s17 }
  0x60   : > { %p3524_p11 = pnand %p3522_p10, %p3851_p8  ;;  %p3531_p2 = por %p3530_p0, %p3529_p13 }
  0x62   : > { %p3525_p12 = pneg %p3524_p11 }
  0x64   : > { %p3532_p5 = pnand %p3531_p2, %p3525_p12 }
  0x66   : > { %3535 = shalt.err (!%p3532_p5)
}
  0x67   : > { %s3740_s10 = smov 192   ;;  %s3741_s9 = smov 12  }
  0x68   : > { %3131 = dma.hbm_to_vmem [thread:$0]  (!%p3837_p6), %s4346_s2, 6144, %s256_s16, [#allocation6], %s3740_s10, %s3740_s10, %s3741_s9  }
  0x69   : > { %s3742_s19 = smov [#allocation10]   ;;  %s3536_s24 = scalar_lea.hbm %s4348_s4, 4096 }
  0x6a   : > { %s281_s20 = sshll.u32 %s3742_s19, 4  ;;  %p3537_p7 = scmp.ne.s32.totalorder %s4348_s4, %s3536_s24  ;;  %s282_s20 = int_to_ptr.vmem [resolvable:$true] %s281_s20 }
  0x6b   : > { %p3543_p1 = scmp.lt.u32.totalorder %s3536_s24, %s4348_s4 }
  0x6c   : > { %p3539_p9 = pnand %p3537_p7, %p3851_p8 }
  0x6e   : > { %p3540_p4 = pneg %p3539_p9 }
  0x70   : > { %p3545_p3 = pnand %p3543_p1, %p3540_p4 }
  0x72   : > { %3548 = shalt.err (!%p3545_p3)
}
  0x73   : > { %s3549_s16 = scalar_lea.vmem %s282_s20, 4096  ;;  %p3557_p13 = scmp.lt.s32.totalorder %s282_s20, %s282_s20 }
  0x74   : > { %p3550_p10 = scmp.ne.s32.totalorder %s282_s20, %s3549_s16  ;;  %p3558_p0 = scmp.lt.s32.totalorder %s3549_s16, %s3549_s16 }
  0x76   : > { %p3552_p11 = pnand %p3550_p10, %p3851_p8  ;;  %p3559_p2 = por %p3558_p0, %p3557_p13 }
  0x78   : > { %p3553_p12 = pneg %p3552_p11 }
  0x7a   : > { %p3560_p5 = pnand %p3559_p2, %p3553_p12 }
  0x7c   : > { %3563 = shalt.err (!%p3560_p5)
}
  0x7d   : > { %s3743_s10 = smov 128   ;;  %s3744_s9 = smov 8  }
  0x7e   : > { %3137 = dma.hbm_to_vmem [thread:$0]  (!%p3837_p6), %s4348_s4, 4096, %s282_s20, [#allocation9], %s3743_s10, %s3743_s10, %s3744_s9  }
  0x7f   : > { %s3745_s13 = smov [#allocation13]   ;;  %s3564_s22 = scalar_lea.hbm %s4350_s6, 768 }
  0x80   : > { %s307_s18 = sshll.u32 %s3745_s13, 4  ;;  %p3565_p7 = scmp.ne.s32.totalorder %s4350_s6, %s3564_s22  ;;  %s308_s18 = int_to_ptr.vmem [resolvable:$true] %s307_s18 }
  0x81   : > { %p3571_p1 = scmp.lt.u32.totalorder %s3564_s22, %s4350_s6 }
  0x82   : > { %p3567_p9 = pnand %p3565_p7, %p3851_p8 }
  0x84   : > { %p3568_p4 = pneg %p3567_p9 }
  0x86   : > { %p3573_p3 = pnand %p3571_p1, %p3568_p4 }
  0x88   : > { %3576 = shalt.err (!%p3573_p3)
}
  0x89   : > { %s3577_s20 = scalar_lea.vmem %s308_s18, 768  ;;  %p3585_p13 = scmp.lt.s32.totalorder %s308_s18, %s308_s18 }
  0x8a   : > { %p3578_p10 = scmp.ne.s32.totalorder %s308_s18, %s3577_s20  ;;  %p3586_p0 = scmp.lt.s32.totalorder %s3577_s20, %s3577_s20 }
  0x8c   : > { %p3580_p11 = pnand %p3578_p10, %p3851_p8  ;;  %p3587_p2 = por %p3586_p0, %p3585_p13 }
  0x8e   : > { %p3581_p12 = pneg %p3580_p11 }
  0x90   : > { %p3588_p5 = pnand %p3587_p2, %p3581_p12 }
  0x92   : > { %3591 = shalt.err (!%p3588_p5)
}
  0x93   : > { %s3746_s10 = smov 384   ;;  %s3747_s9 = smov 24  }
  0x94   : > { %3143 = dma.hbm_to_vmem [thread:$0]  (!%p3837_p6), %s4350_s6, 768, %s308_s18, [#allocation12], %s3746_s10, %s3746_s10, %s3747_s9  }
  0x95   : > { %s3748_s13 = smov [#allocation14]   ;;  %s3592_s24 = scalar_lea.hbm %s4351_s7, 1024 }
  0x96   : > { %s320_s19 = sshll.u32 %s3748_s13, 4  ;;  %p3593_p7 = scmp.ne.s32.totalorder %s4351_s7, %s3592_s24  ;;  %s321_s19 = int_to_ptr.vmem [resolvable:$true] %s320_s19 }
  0x97   : > { %p3599_p1 = scmp.lt.u32.totalorder %s3592_s24, %s4351_s7 }
  0x98   : > { %p3595_p9 = pnand %p3593_p7, %p3851_p8 }
  0x9a   : > { %p3596_p4 = pneg %p3595_p9 }
  0x9c   : > { %p3601_p3 = pnand %p3599_p1, %p3596_p4 }
  0x9e   : > { %3604 = shalt.err (!%p3601_p3)
}
  0x9f   : > { %s3605_s18 = scalar_lea.vmem %s321_s19, 1024  ;;  %p3613_p13 = scmp.lt.s32.totalorder %s321_s19, %s321_s19 }
  0xa0   : > { %p3606_p10 = scmp.ne.s32.totalorder %s321_s19, %s3605_s18  ;;  %p3614_p0 = scmp.lt.s32.totalorder %s3605_s18, %s3605_s18 }
  0xa2   : > { %p3608_p11 = pnand %p3606_p10, %p3851_p8  ;;  %p3615_p2 = por %p3614_p0, %p3613_p13 }
  0xa4   : > { %p3609_p12 = pneg %p3608_p11 }
  0xa6   : > { %p3616_p5 = pnand %p3615_p2, %p3609_p12 }
  0xa8   : > { %3619 = shalt.err (!%p3616_p5)
}
  0xa9   : > { %s4361_s10 = smov 4   ;;  %s4362_s9 = smov 64  }
  0xaa   : > { %3146 = dma.hbm_to_vmem [thread:$0]  (!%p3837_p6), %s4351_s7, 1024, %s321_s19, [#allocation15], %s4362_s9, %s4362_s9, %s4361_s10  }
  0xab   : > { %s2667_s15 = sadd.s32 4294967294, %s3732_s30   ;;  %s3996_s23 = sadd.s32 1, %s3732_s30  }
  0xac   : > { %s35_s13 = sadd.s32 1, %s3728_s29  ;;  %s32_s21 = ssub.s32 %s3732_s30, %s3996_s23 }
  0xad   : > { %p42_p8 = scmp.ne.s32.totalorder %s3728_s29, %s3724_s28  ;;  %p33_p7 = scmp.eq.s32.totalorder %s32_s21, 0 }
  0xae   : > { %p43_p9 = scmp.eq.s32.totalorder %s3732_s30, 0  ;;  %p48_p4 = scmp.ne.s32.totalorder %s3724_s28, %s3720_s27 }
  0xaf   : > { %p219_p1 = scmp.eq.s32.totalorder %s3821_s11, 1  ;;  %p4363_p10 = scmp.eq.s32.totalorder %s3821_s11, 0 }
  0xb0   : > { %s4008_s22 = scalar_select %p33_p7, %s3728_s29, %s35_s13  }
  0xb1   : > { %p44_p3 = por %p43_p9, %p42_p8  ;;  %p4012_p11 = por %p4363_p10, %p48_p4 }
  0xb2   : > { %p4016_p6 = por %p219_p1, %p42_p8  ;;  %p225_p12 = scmp.eq.s32.totalorder %s2667_s15, 1 }
  0xb3   : > { %p3162_p13 = scmp.lt.s32.totalorder %s3732_s30, 2  ;;  %s334_s14 = sand.u32 1, %s3728_s29  }
  0xb4   : > { %s4365_s19 = scalar_select %p4016_p6, 1, 0 }
  0xb5   : > { %p4022_p0 = por %p225_p12, %p48_p4  ;;  %s2677_s16 = sshll.u32 %s334_s14, 3 }
  0xb6   : > { %s2678_s20 = sshll.u32 %s3732_s30, 7  ;;  %s338_s25 = scalar_lea.vmem [#allocation2], %s2677_s16 }
  0xb7   : > { %s4366_s17 = scalar_select %p4022_p0, 1, 0 }
  0xb8   : > { %s4030_s9 = scalar_lea.hbm %s4344_s0, %s2678_s20  ;;  %s345_s26 = sshll.u32 %s338_s25, 4  ;;  %s4036_s26 = int_to_ptr.vmem [resolvable:$true] %s345_s26 }
  0xb9   : > { %p4032_p2 = pnand %p3162_p13, %p44_p3  ;;  %s335_s13 = scalar_lea.sflag [#allocation3], %s334_s14 }
  0xba   : > { %s3620_s21 = scalar_lea.hbm %s4030_s9, 128  ;;  %s3625_s18 = scalar_lea.hbm %s4344_s0, 256 }
  0xbb   : > { %p3621_p5 = scmp.ne.s32.totalorder %s4030_s9, %s3620_s21  ;;  %p3622_p8 = pneg %p4032_p2 }
  0xbc   : > { %p3626_p4 = scmp.lt.u32.totalorder %s4030_s9, %s4344_s0  ;;  %p3627_p1 = scmp.lt.u32.totalorder %s3625_s18, %s3620_s21 }
  0xbd   : > { %p3623_p7 = pnand %p3622_p8, %p3621_p5  ;;  %p3629_p10 = scmp.lt.u32.totalorder %s3620_s21, %s4030_s9 }
  0xbe   : > { %p3628_p3 = por %p3627_p1, %p3626_p4 }
  0xbf   : > { %p3624_p9 = pneg %p3623_p7 }
  0xc0   : > { %p3630_p12 = por %p3629_p10, %p3628_p3 }
  0xc2   : > { %p3631_p13 = pnand %p3630_p12, %p3624_p9 }
  0xc4   : > { %3634 = shalt.err (!%p3631_p13)
}
  0xc5   : > { %s3635_s14 = scalar_lea.vmem %s4036_s26, 128  ;;  %s3749_s20 = smov [#allocation2]  }
  0xc6   : > { %p3636_p5 = scmp.ne.s32.totalorder %s4036_s26, %s3635_s14  ;;  %s3640_s16 = sshll.u32 %s3749_s20, 4  ;;  %s3641_s16 = int_to_ptr.vmem [resolvable:$false] %s3640_s16 }
  0xc7   : > { %s3642_s10 = scalar_lea.vmem %s3641_s16, 256  ;;  %p3643_p6 = scmp.lt.s32.totalorder %s4036_s26, %s3641_s16 }
  0xc8   : > { %p3638_p7 = pnand %p3636_p5, %p3622_p8  ;;  %p3644_p4 = scmp.lt.s32.totalorder %s3642_s10, %s3635_s14 }
  0xca   : > { %p3639_p0 = pneg %p3638_p7  ;;  %p3645_p1 = por %p3644_p4, %p3643_p6 }
  0xcc   : > { %p3646_p3 = pnand %p3645_p1, %p3639_p0 }
  0xce   : > { %3649 = shalt.err (!%p3646_p3)
}
  0xcf   : > { %3150 = dma.hbm_to_vmem [thread:$0]  (!%p4032_p2), %s4030_s9, 128, %s4036_s26, %s335_s13  }
  0xd0   : > { %p4368_p9 = scmp.ne.s32.totalorder %s4358_s12, 0 }
  0xd1   : > { %s4066_s21 = sand.u32 (!%p4368_p9), 1, %s3724_s28  }
  0xd2   : > { %354 = sbr.rel (%p4368_p9) target bundleno = 6208 (0x1840), region = 52  ;;  %s2680_s18 = sshll.u32 (!%p4368_p9), %s4066_s21, 3 }
  0xd3   : > { %s357_s25 = scalar_lea.sflag (!%p4368_p9), [#allocation3], %s4066_s21  ;;  %s360_s14 = scalar_lea.vmem (!%p4368_p9), [#allocation2], %s2680_s18 }
  0xd9   : > { %3695 = dma.done.wait (%p4012_p11), %s357_s25, 128  }
  0xda   : > { %3697 = vsyncadd (%p4012_p11), %s357_s25, 4294967168  ;;  %p4369_p6 = scmp.eq.s32.totalorder %s3821_s11, 0 }
  0xdc   : > { %3699 = dma.done.wait (%p4369_p6), [#allocation6], 6272   ;;  %p4370_p0 = pmov %p4369_p6 }
  0xde   : > { %3701 = vsyncadd (%p4370_p0), [#allocation6], 4294961024  ;;  %p4371_p2 = pmov %p4370_p0 }
  0xdf   : > { %p4372_p8 = pmov %p4370_p0 }
  0xe0   : > { %3703 = dma.done.wait (%p4371_p2), [#allocation9], 6144  }
  0xe1   : > { %3705 = vsyncadd (%p4372_p8), [#allocation9], 4294961152  ;;  %p4373_p10 = pmov %p4370_p0 }
  0xe2   : > { %p4374_p12 = pmov %p4370_p0 }
  0xe3   : > { %3707 = dma.done.wait (%p4373_p10), [#allocation12], 4864  }
  0xe4   : > { %3709 = vsyncadd (%p4374_p12), [#allocation12], 4294962432  ;;  %p4375_p11 = pmov %p4370_p0 }
  0xe5   : > { %p4376_p13 = pmov %p4370_p0 }
  0xe6   : > { %3711 = dma.done.wait (%p4375_p11), [#allocation15], 1024  }
  0xe7   : > { %3713 = vsyncadd (%p4376_p13), [#allocation15], 4294966272  ;;  %v425_v0 = vld [vmem:[%s360_s14] sm:$0xff]  ;;  %v3750_v3 = vmov 0.0   ;;  %v3228_v6 = vld [vmem:[#allocation7 + $0x18] ss:$12 sps:$4 sm:$0xff]   ;;  %v484_v41 = vlaneseq }
  0xe8   : > { %426 = vadd.xlane.f32.xlu0 %v425_v0  ;;  %v3222_v1 = vld [vmem:[#allocation7 + $0x4] ss:$12 sps:$4 sm:$0xff]   ;;  %v3224_v2 = vld [vmem:[#allocation7] ss:$12 sps:$4 sm:$0xff]   ;;  %2945 = vmatprep.subr.bf16.mxu1 %v3750_v3  ;;  %v3225_v4 = vld [vmem:[#allocation7 + $0x8] ss:$12 sps:$4 sm:$0xff]  }
  0xe9   : > { %v3226_v5 = vld [vmem:[#allocation7 + $0x1c] ss:$12 sps:$4 sm:$0xff]   ;;  %624 = vmatprep.subr.bf16.mxu0 %v3222_v1  ;;  %v3229_v7 = vld [vmem:[#allocation7 + $0x20] ss:$12 sps:$4 sm:$0xff]   ;;  %2946 = vmatpush3.bf16.msra.mxu1 %v3225_v4  ;;  %v3233_v14 = vld [vmem:[#allocation7 + $0x38] ss:$12 sps:$4 sm:$0xff]  }
  0xea   : > { %v3230_v8 = vld [vmem:[#allocation7 + $0x34] ss:$12 sps:$4 sm:$0xff]   ;;  %625 = vmatpush1.bf16.msra.mxu0 %v3224_v2  ;;  %2947 = vmatprep.subr.bf16.mxu1 %v3750_v3  ;;  %v3232_v13 = vld [vmem:[#allocation7 + $0x30] ss:$12 sps:$4 sm:$0xff]   ;;  %v3234_v15 = vld [vmem:[#allocation7 + $0x4c] ss:$12 sps:$4 sm:$0xff]  }
  0xeb   : > { %626 = vmatprep.subr.bf16.mxu0 %v3226_v5  ;;  %v3236_v16 = vld [vmem:[#allocation7 + $0x48] ss:$12 sps:$4 sm:$0xff]   ;;  %v3237_v17 = vld [vmem:[#allocation7 + $0x50] ss:$12 sps:$4 sm:$0xff]   ;;  %v3240_v19 = vld [vmem:[#allocation7 + $0x60] ss:$12 sps:$4 sm:$0xff]  }
  0xec   : > { %v3238_v18 = vld [vmem:[#allocation7 + $0x64] ss:$12 sps:$4 sm:$0xff]   ;;  %v3241_v20 = vld [vmem:[#allocation7 + $0x68] ss:$12 sps:$4 sm:$0xff]   ;;  %v3245_v23 = vld [vmem:[#allocation7 + $0x80] ss:$12 sps:$4 sm:$0xff]  }
  0xed   : > { %2948 = vmatpush3.bf16.msra.mxu1 %v3229_v7  ;;  %v3242_v21 = vld [vmem:[#allocation7 + $0x7c] ss:$12 sps:$4 sm:$0xff]   ;;  %v3244_v22 = vld [vmem:[#allocation7 + $0x78] ss:$12 sps:$4 sm:$0xff]   ;;  %v3246_v24 = vld [vmem:[#allocation7 + $0x94] ss:$12 sps:$4 sm:$0xff]  }
  0xee   : > { %627 = vmatpush1.bf16.msra.mxu0 %v3228_v6  ;;  %2949 = vmatprep.subr.bf16.mxu1 %v3750_v3  ;;  %v3751_v25 = vmov 0   ;;  %vm3752_vm0 = vmmov 0   ;;  %v3248_v26 = vld [vmem:[#allocation7 + $0x90] ss:$12 sps:$4 sm:$0xff]   ;;  %v3249_v27 = vld [vmem:[#allocation7 + $0x98] ss:$12 sps:$4 sm:$0xff]  }
  0xef   : > { %628 = vmatprep.subr.bf16.mxu0 %v3230_v8  ;;  %656 = vmatprep.mubr.bf16.mxu0 %v3751_v25  ;;  %v3250_v28 = vld [vmem:[#allocation7 + $0xac] ss:$12 sps:$4 sm:$0xff]   ;;  %v3252_v29 = vld [vmem:[#allocation7 + $0xa8] ss:$12 sps:$4 sm:$0xff]   ;;  %v3253_v30 = vld [vmem:[#allocation7 + $0xb0] ss:$12 sps:$4 sm:$0xff]  }
  0xf0   : > { %2961 = vmatprep.mubr.msk.bf16.mxu1 %vm3752_vm0, %v3750_v3  ;;  %v2689_v35 = vld [vmem:[#allocation5] ss:$0 sm:$0xff]  ;;  %v2690_v37 = vld [vmem:[#allocation5 + $0x1] ss:$0 sm:$0xff]  ;;  %v4113_v42 = vshrl.u32 %v484_v41, 7  ;;  %v4118_v44 = vld [vmem:[#allocation13 + $0x10] sm:$0xff] }
  0xf1   : > { %2950 = vmatpush3.bf16.msra.mxu1 %v3233_v14  ;;  %v4120_v45 = vld [vmem:[#allocation13 + $0x8] sm:$0xff]  ;;  %v4122_v46 = vld [vmem:[#allocation13] sm:$0xff]  ;;  %vm772_vm1 = vcmask 1043456   ;;  %vm708_vm2 = vcmask 523264   ;;  %s3753_s12 = smov 64   ;;  %vm756_vm3 = vcmask 64512  }
  0xf2   : > { %629 = vmatpush1.bf16.msra.mxu0 %v3232_v13  ;;  %2951 = vmatprep.subr.bf16.mxu1 %v3750_v3  ;;  %v4116_v43 = vsub.s32 0, %v4113_v42  ;;  %v3255_v41 = vld [vmem:[#allocation8 + $0x8] sm:$0xff]   ;;  %s2837_s24 = sshll.u32 %s3821_s11, 7  ;;  %s420_s9 = scalar_lea.vmem [#allocation16], %s2680_s18 }
  0xf3   : > { %630 = vmatprep.subr.bf16.mxu0 %v3234_v15  ;;  %s2530_s26 = sshll.u32 %s420_s9, 4  ;;  %s4300_s20 = scalar_lea.hbm %s4352_s8, %s2837_s24  ;;  %s4302_s26 = int_to_ptr.vmem [resolvable:$true] %s2530_s26 }
  0xf4   : > { %v495_v47 = vrot.slane %v4118_v44, %v4116_v43  ;;  %v491_v48 = vrot.slane %v4120_v45, %v4116_v43  ;;  %v487_v49 = vrot.slane %v4122_v46, %v4116_v43  ;;  %s2517_s11 = scalar_lea.sflag [#allocation4], %s4066_s21  ;;  %s3650_s16 = scalar_lea.vmem %s4302_s26, 128 }
  0xf5   : > { %2952 = vmatpush3.bf16.msra.mxu1 %v3237_v17  ;;  %p3651_p5 = scmp.ne.s32.totalorder %s4302_s26, %s3650_s16  ;;  %p4377_p7 = scmp.ne.s32.totalorder %s4365_s19, 0 }
  0xf6   : > { %631 = vmatpush1.bf16.msra.mxu0 %v3236_v16  ;;  %2953 = vmatprep.subr.bf16.mxu1 %v3750_v3  ;;  %s3754_s10 = smov [#allocation16]  }
  0xf7   : > { %632 = vmatprep.subr.bf16.mxu0 %v3238_v18  ;;  %p3652_p4 = pnand %p3651_p5, %p4377_p7  ;;  %s3654_s18 = sshll.u32 %s3754_s10, 4  ;;  %s3655_s18 = int_to_ptr.vmem [resolvable:$false] %s3654_s18 }
  0xf8   : > { %s3656_s25 = scalar_lea.vmem %s3655_s18, 256  ;;  %p3657_p3 = scmp.lt.s32.totalorder %s4302_s26, %s3655_s18 }
  0xf9   : > { %2954 = vmatpush3.bf16.msra.mxu1 %v3241_v20  ;;  %p3653_p1 = pneg %p3652_p4  ;;  %p3658_p9 = scmp.lt.s32.totalorder %s3656_s25, %s3650_s16 }
  0xfa   : > { %633 = vmatpush1.bf16.msra.mxu0 %v3240_v19  ;;  %2955 = vmatprep.subr.bf16.mxu1 %v3750_v3 }
  0xfb   : > { %634 = vmatprep.subr.bf16.mxu0 %v3242_v21  ;;  %p3659_p6 = por %p3658_p9, %p3657_p3 }
  0xfd   : > { %2956 = vmatpush3.bf16.msra.mxu1 %v3245_v23  ;;  %p3660_p0 = pnand %p3659_p6, %p3653_p1 }
  0xfe   : > { %635 = vmatpush1.bf16.msra.mxu0 %v3244_v22  ;;  %2957 = vmatprep.subr.bf16.mxu1 %v3750_v3 }
  0xff   : > { %636 = vmatprep.subr.bf16.mxu0 %v3246_v24 }
 0x101   : > { %2958 = vmatpush3.bf16.msra.mxu1 %v3249_v27 }
 0x102   : > { %637 = vmatpush1.bf16.msra.mxu0 %v3248_v26  ;;  %2959 = vmatprep.subr.bf16.mxu1 %v3750_v3 }
 0x103   : > { %638 = vmatprep.subr.bf16.mxu0 %v3250_v28 }
 0x105   : > { %2960 = vmatpush3.bf16.msra.mxu1 %v3253_v30 }
 0x106   : > { %639 = vmatpush1.bf16.msra.mxu0 %v3252_v29  ;;  %2971 = vmatprep.subr.bf16.mxu1 %v3750_v3 }
 0x107   : > { %2965 = vmatprep.subr.bf16.mxu0 %v3750_v3 }
 0x175   : > { %v427_v9 = vpop.xlane.xlu0 %426 }
 0x176   : > { %v429_v10 = vmul.f32 0.0078125, %v427_v9 }
 0x178   : > { %v430_v11 = vsub.f32 %v425_v0, %v429_v10 }
 0x17a   : > { %v431_v12 = vmul.f32 %v430_v11, %v430_v11 }
 0x17c   : > { %432 = vadd.xlane.f32.xlu0 %v431_v12 }
 0x209   : > { %v433_v31 = vpop.xlane.xlu0 %432 }
 0x20a   : > { %v434_v32 = vmul.f32 0.0078125, %v433_v31 }
 0x20c   : > { %v435_v33 = vadd.f32 1e-12, %v434_v32 }
 0x20e   : > { %3390 = vrsqrt.f32 %v435_v33 }
 0x218   : > { %v3391_v34 = vpop.eup %3390 }
 0x219   : > { %v437_v36 = vmul.f32 %v3391_v34, %v430_v11 }
 0x21b   : > { %v442_v38 = vmul.f32 %v2689_v35, %v437_v36 }
 0x21d   : > { %v4105_v39 = vadd.f32 %v2690_v37, %v442_v38 }
 0x21f   : > { %v483_v40 = vpack.c.bf16 %v4105_v39, %v4105_v39 }
 0x221   : > { %657 = vmatmul.mubr.bf16.vlgmr.msra.gmra.mrb[0].mxu0 %v483_v40  ;;  %2962 = vmatmul.mubr.bf16.vlgmr.msra.gmra.mrb[0].mxu1 %v483_v40  ;;  %v3254_v40 = vld [vmem:[#allocation8] sm:$0xff]  }
 0x222   : > { %2967 = vmatprep.mubr.msk.bf16.mxu0 %vm3752_vm0, %v3750_v3  ;;  %2973 = vmatprep.mubr.msk.bf16.mxu1 %vm3752_vm0, %v3750_v3 }
 0x2f4   : > { %v658_v50 = vpop.f32.mrb[0].mxu0  ;;  %v699_v51 = vpop.f32.mrb[0].mxu1 }
 0x2f5   : > { %v700_v52 = vadd.f32 %v699_v51, %v495_v47  ;;  %v660_v53 = vpop.f32.mrb[1].mxu0  ;;  %v2963_v54 = vpop.f32.mrb[1].mxu1  ;;  %v659_v61 = vadd.f32 %v658_v50, %v487_v49  ;;  %v3256_v47 = vld [vmem:[#allocation8 + $0x10] sm:$0xff]   ;;  %v3257_v49 = vld [vmem:[#allocation8 + $0x18] sm:$0xff]  }
 0x2f6   : > { %v661_v55 = vadd.f32 %v660_v53, %v491_v48  ;;  %v662_v56 = vpop.f32.mrb[2].mxu0  ;;  %v702_v57 = vpop.f32.mrb[2].mxu1  ;;  %v3258_v53 = vld [vmem:[#allocation8 + $0x20] sm:$0xff]   ;;  %v3259_v54 = vld [vmem:[#allocation8 + $0x28] sm:$0xff]  }
 0x2f7   : > { %v707_v58 = vpack.c.bf16 %v700_v52, %v700_v52  ;;  %v663_v59 = vpop.f32.mrb[3].mxu0  ;;  %v2964_v60 = vpop.f32.mrb[3].mxu1  ;;  %v705_v1 = vpack.c.bf16 %v659_v61, %v659_v61  ;;  %v3261_v56 = vld [vmem:[#allocation8 + $0x38] sm:$0xff]  }
 0x2f8   : > { %v706_v62 = vpack.c.bf16 %v661_v55, %v661_v55  ;;  %v3260_v55 = vld [vmem:[#allocation8 + $0x30] sm:$0xff]  }
 0x2f9   : > { %v774_v63 = vsel %vm772_vm1, %v707_v58, 0 }
 0x2fa   : > { %v713_v0 = vsel %vm708_vm2, %v706_v62, 0  ;;  %2972 = vmatpush3.bf16.msra.mxu1 %v774_v63  ;;  %820 = vrot.lane.b32.xlu1 %v706_v62, %s3753_s12 }
 0x2fb   : > { %2966 = vmatpush3.bf16.xpose.msra.mxu0 %v713_v0  ;;  %2983 = vmatprep.subr.bf16.mxu1 %v3750_v3  ;;  %v4165_v0 = vsub.s32 2, %v4113_v42 }
 0x2fc   : > { %2977 = vmatprep.subr.bf16.mxu0 %v3750_v3 }
 0x2fe   : > { %817 = vrot.lane.b32.xlu1 %v705_v1, %s3753_s12 }
 0x302   : > { %2968 = vmatmul.mubr.msk.bf16.vlgmr.msra.gmra.mrb[4].mxu0 %vm708_vm2, %v705_v1  ;;  %v955_v1 = vrot.slane %v4122_v46, %v4165_v0 }
 0x303   : > { %2979 = vmatprep.mubr.msk.bf16.mxu0 %vm3752_vm0, %v3750_v3 }
 0x36c   : > { %v821_v2 = vpop.permute.xlu1 %820 }
 0x36d   : > { %v826_v4 = vsel %vm708_vm2, %v821_v2, 0 }
 0x36e   : > { %2978 = vmatpush3.bf16.xpose.msra.mxu0 %v826_v4 }
 0x36f   : > { %2989 = vmatprep.subr.bf16.mxu0 %v3750_v3 }
 0x370   : > { %v818_v5 = vpop.permute.xlu1 %817 }
 0x375   : > { %2980 = vmatmul.mubr.msk.bf16.vlgmr.msra.gmra.mrb[8].mxu0 %vm708_vm2, %v818_v5 }
 0x376   : > { %3005 = vmatprep.mubr.msk.bf16.mxu0 %vm3752_vm0, %v3750_v3  ;;  %2990 = vmatpush3.bf16.msra.mxu0 %v3254_v40  ;;  %v3286_v40 = vld [vmem:[#allocation11 + $0x40] sm:$0xff]  }
 0x377   : > { %2991 = vmatprep.subr.bf16.mxu0 %v3750_v3 }
 0x37a   : > { %2992 = vmatpush3.bf16.msra.mxu0 %v3255_v41  ;;  %v3287_v41 = vld [vmem:[#allocation11] sm:$0xff]  }
 0x37b   : > { %2993 = vmatprep.subr.bf16.mxu0 %v3750_v3 }
 0x37e   : > { %2994 = vmatpush3.bf16.msra.mxu0 %v3256_v47  ;;  %v3288_v47 = vld [vmem:[#allocation11 + $0x48] sm:$0xff]  }
 0x37f   : > { %2995 = vmatprep.subr.bf16.mxu0 %v3750_v3 }
 0x382   : > { %2996 = vmatpush3.bf16.msra.mxu0 %v3257_v49  ;;  %v3290_v49 = vld [vmem:[#allocation11 + $0x50] sm:$0xff]  }
 0x383   : > { %2997 = vmatprep.subr.bf16.mxu0 %v3750_v3 }
 0x386   : > { %2998 = vmatpush3.bf16.msra.mxu0 %v3258_v53  ;;  %v3294_v53 = vld [vmem:[#allocation11 + $0x60] sm:$0xff]  }
 0x387   : > { %2999 = vmatprep.subr.bf16.mxu0 %v3750_v3 }
 0x38a   : > { %3000 = vmatpush3.bf16.msra.mxu0 %v3259_v54  ;;  %v3295_v54 = vld [vmem:[#allocation11 + $0x20] sm:$0xff]  }
 0x38b   : > { %3001 = vmatprep.subr.bf16.mxu0 %v3750_v3 }
 0x38e   : > { %3002 = vmatpush3.bf16.msra.mxu0 %v3260_v55  ;;  %v3296_v55 = vld [vmem:[#allocation11 + $0x68] sm:$0xff]  }
 0x38f   : > { %3003 = vmatprep.subr.bf16.mxu0 %v3750_v3 }
 0x392   : > { %3004 = vmatpush3.bf16.msra.mxu0 %v3261_v56  ;;  %v3297_v56 = vld [vmem:[#allocation11 + $0x28] sm:$0xff]  }
 0x393   : > { %2866 = vmatprep.subr.bf16.mxu0 %v3286_v40  ;;  %v3304_v40 = vld [vmem:[#allocation7 + $0xc4] ss:$12 sps:$4 sm:$0xff]  }
 0x3d5   : > { %v749_v6 = vpop.f32.mrb[4].mxu0 }
 0x3d6   : > { %v755_v7 = vmul.f32 0.125, %v749_v6  ;;  %v2969_v8 = vpop.f32.mrb[5].mxu0 }
 0x3d7   : > { %v752_v9 = vpop.f32.mrb[6].mxu0 }
 0x3d8   : > { %v2970_v10 = vpop.f32.mrb[7].mxu0  ;;  %v757_v11 = vsel %vm756_vm3, %v755_v7, -inf  ;;  %v3262_v9 = vld [vmem:[#allocation10] ss:$8 sps:$4 sm:$0xff]  }
 0x3d9   : > { %758 = vmax.xlane.f32.xlu0 %v757_v11  ;;  %v3264_v10 = vld [vmem:[#allocation10 + $0x4] ss:$8 sps:$4 sm:$0xff]   ;;  %v3267_v11 = vld [vmem:[#allocation10 + $0x14] ss:$8 sps:$4 sm:$0xff]  }
 0x448   : > { %v862_v12 = vpop.f32.mrb[8].mxu0 }
 0x449   : > { %v868_v13 = vmul.f32 0.125, %v862_v12  ;;  %v2981_v14 = vpop.f32.mrb[9].mxu0  ;;  %v3265_v12 = vld [vmem:[#allocation10 + $0x10] ss:$8 sps:$4 sm:$0xff]  }
 0x44a   : > { %v865_v15 = vpop.f32.mrb[10].mxu0  ;;  %v3268_v14 = vld [vmem:[#allocation10 + $0x20] ss:$8 sps:$4 sm:$0xff]  }
 0x44b   : > { %v2982_v16 = vpop.f32.mrb[11].mxu0  ;;  %v869_v17 = vsel %vm756_vm3, %v868_v13, -inf }
 0x44c   : > { %870 = vmax.xlane.f32.xlu1 %v869_v17 }
 0x466   : > { %v759_v18 = vpop.xlane.xlu0 %758 }
 0x467   : > { %v760_v19 = vsub.f32 %v755_v7, %v759_v18 }
 0x469   : > { %v761_v20 = vmul.f32 1.442695, %v760_v19  ;;  %v3273_v19 = vld [vmem:[#allocation10 + $0x34] ss:$8 sps:$4 sm:$0xff]  }
 0x46b   : > { %3392 = vpow2.f32 %v761_v20  ;;  %v3276_v20 = vld [vmem:[#allocation10 + $0x44] ss:$8 sps:$4 sm:$0xff]  }
 0x475   : > { %v3393_v21 = vpop.eup %3392 }
 0x476   : > { %v763_v22 = vsel %vm756_vm3, %v3393_v21, 0.0 }
 0x477   : > { %764 = vadd.xlane.f32.xlu0 %v763_v22  ;;  %v3279_v22 = vld [vmem:[#allocation10 + $0x54] ss:$8 sps:$4 sm:$0xff]  }
 0x4d9   : > { %v871_v23 = vpop.xlane.xlu1 %870 }
 0x4da   : > { %v872_v24 = vsub.f32 %v868_v13, %v871_v23  ;;  %v3270_v13 = vld [vmem:[#allocation10 + $0x24] ss:$8 sps:$4 sm:$0xff]   ;;  %v3277_v23 = vld [vmem:[#allocation10 + $0x50] ss:$8 sps:$4 sm:$0xff]  }
 0x4dc   : > { %v873_v26 = vmul.f32 1.442695, %v872_v24  ;;  %v3282_v24 = vld [vmem:[#allocation10 + $0x64] ss:$8 sps:$4 sm:$0xff]  }
 0x4de   : > { %3394 = vpow2.f32 %v873_v26  ;;  %v3280_v26 = vld [vmem:[#allocation10 + $0x60] ss:$8 sps:$4 sm:$0xff]  }
 0x4e8   : > { %v3395_v27 = vpop.eup %3394 }
 0x4e9   : > { %v875_v28 = vsel %vm756_vm3, %v3395_v27, 0.0 }
 0x4ea   : > { %876 = vadd.xlane.f32.xlu0 %v875_v28  ;;  %v3283_v28 = vld [vmem:[#allocation10 + $0x70] ss:$8 sps:$4 sm:$0xff]  }
 0x500   : > { %882 = vrot.lane.b32.xlu0 %v707_v58, %s3753_s12 }
 0x504   : > { %v765_v29 = vpop.xlane.xlu0 %764 }
 0x505   : > { %3396 = vrcp.f32 %v765_v29 }
 0x50f   : > { %v3397_v30 = vpop.eup %3396 }
 0x510   : > { %v767_v31 = vmul.f32 %v3397_v30, %v3393_v21  ;;  %v3274_v21 = vld [vmem:[#allocation10 + $0x40] ss:$8 sps:$4 sm:$0xff]  }
 0x512   : > { %v768_v32 = vpack.c.bf16 %v767_v31, %v767_v31 }
 0x514   : > { %2974 = vmatmul.mubr.msk.bf16.vlgmr.msra.gmra.mrb[4].mxu1 %vm756_vm3, %v768_v32  ;;  %v1059_v32 = vrot.slane %v4120_v45, %v4165_v0 }
 0x515   : > { %2985 = vmatprep.mubr.msk.bf16.mxu1 %vm3752_vm0, %v3750_v3 }
 0x577   : > { %v877_v33 = vpop.xlane.xlu0 %876 }
 0x578   : > { %3398 = vrcp.f32 %v877_v33 }
 0x57b   : > { %v883_v34 = vpop.permute.xlu0 %882 }
 0x57c   : > { %v888_v35 = vsel %vm772_vm1, %v883_v34, 0  ;;  %v1064_v34 = vrot.slane %v4118_v44, %v4165_v0 }
 0x57d   : > { %2984 = vmatpush3.bf16.msra.mxu1 %v888_v35 }
 0x57e   : > { %1171 = vmatprep.subr.bf16.mxu1 %v3264_v10 }
 0x582   : > { %v3399_v36 = vpop.eup %3398 }
 0x583   : > { %v879_v37 = vmul.f32 %v3399_v36, %v3395_v27  ;;  %v3285_v27 = vld [vmem:[#allocation10 + $0x74] ss:$8 sps:$4 sm:$0xff]  }
 0x585   : > { %v880_v38 = vpack.c.bf16 %v879_v37, %v879_v37 }
 0x587   : > { %2986 = vmatmul.mubr.msk.bf16.vlgmr.msra.gmra.mrb[8].mxu1 %vm756_vm3, %v880_v38 }
 0x588   : > { %1203 = vmatprep.mubr.bf16.mxu1 %v3751_v25  ;;  %1172 = vmatpush1.bf16.msra.mxu1 %v3262_v9 }
 0x589   : > { %1173 = vmatprep.subr.bf16.mxu1 %v3267_v11 }
 0x58c   : > { %1174 = vmatpush1.bf16.msra.mxu1 %v3265_v12 }
 0x58d   : > { %1175 = vmatprep.subr.bf16.mxu1 %v3270_v13 }
 0x590   : > { %1176 = vmatpush1.bf16.msra.mxu1 %v3268_v14 }
 0x591   : > { %1177 = vmatprep.subr.bf16.mxu1 %v3273_v19 }
 0x5e7   : > { %v810_v48 = vpop.f32.mrb[4].mxu1 }
 0x5e8   : > { %v2975_v50 = vpop.f32.mrb[5].mxu1 }
 0x5e9   : > { %v813_v51 = vpop.f32.mrb[6].mxu1  ;;  %v3291_v50 = vld [vmem:[#allocation11 + $0x10] sm:$0xff]  }
 0x5ea   : > { %v2976_v52 = vpop.f32.mrb[7].mxu1  ;;  %v3292_v51 = vld [vmem:[#allocation11 + $0x58] sm:$0xff]  }
 0x5eb   : > { %v3293_v52 = vld [vmem:[#allocation11 + $0x18] sm:$0xff]  }
 0x65a   : > { %v924_v57 = vpop.f32.mrb[8].mxu1 }
 0x65b   : > { %931 = vrot.lane.b32.xlu0 %v924_v57, %s3753_s12  ;;  %v2987_v58 = vpop.f32.mrb[9].mxu1  ;;  %v3298_v57 = vld [vmem:[#allocation11 + $0x70] sm:$0xff]  }
 0x65c   : > { %v927_v59 = vpop.f32.mrb[10].mxu1  ;;  %v3299_v58 = vld [vmem:[#allocation11 + $0x30] sm:$0xff]  }
 0x65d   : > { %v2988_v60 = vpop.f32.mrb[11].mxu1  ;;  %v3300_v59 = vld [vmem:[#allocation11 + $0x78] sm:$0xff]  }
 0x65e   : > { %v3301_v60 = vld [vmem:[#allocation11 + $0x38] sm:$0xff]  }
 0x6cd   : > { %v932_v61 = vpop.permute.xlu0 %931 }
 0x6ce   : > { %v934_v62 = vsel %vm708_vm2, %v810_v48, %v932_v61  ;;  %v3289_v48 = vld [vmem:[#allocation11 + $0x8] sm:$0xff]   ;;  %v4181_v61 = vsub.s32 1, %v4113_v42 }
 0x6cf   : > { %v951_v63 = vpack.c.bf16 %v934_v62, %v934_v62 }
 0x6d0   : > { %v1086_v62 = vrot.slane %v4122_v46, %v4181_v61 }
 0x6d1   : > { %3006 = vmatmul.mubr.bf16.vlgmr.msra.gmra.mrb[12].mxu0 %v951_v63  ;;  %v1090_v63 = vrot.slane %v4120_v45, %v4181_v61 }
 0x6d2   : > { %2867 = vmatpush3.bf16.msra.mxu0 %v3287_v41  ;;  %v3305_v41 = vld [vmem:[#allocation7 + $0xc8] ss:$12 sps:$4 sm:$0xff]  }
 0x6d3   : > { %2868 = vmatprep.subr.bf16.mxu0 %v3288_v47  ;;  %v3308_v47 = vld [vmem:[#allocation7 + $0xdc] ss:$12 sps:$4 sm:$0xff]  }
 0x6d6   : > { %2869 = vmatpush3.bf16.msra.mxu0 %v3289_v48  ;;  %v3306_v48 = vld [vmem:[#allocation7 + $0xd8] ss:$12 sps:$4 sm:$0xff]  }
 0x6d7   : > { %2870 = vmatprep.subr.bf16.mxu0 %v3290_v49  ;;  %v3310_v49 = vld [vmem:[#allocation7 + $0xf0] ss:$12 sps:$4 sm:$0xff]  }
 0x6da   : > { %2871 = vmatpush3.bf16.msra.mxu0 %v3291_v50 }
 0x6db   : > { %2872 = vmatprep.subr.bf16.mxu0 %v3292_v51 }
 0x6de   : > { %2873 = vmatpush3.bf16.msra.mxu0 %v3293_v52 }
 0x6df   : > { %2874 = vmatprep.subr.bf16.mxu0 %v3294_v53  ;;  %v3313_v53 = vld [vmem:[#allocation7 + $0xf8] ss:$12 sps:$4 sm:$0xff]  }
 0x6e2   : > { %2875 = vmatpush3.bf16.msra.mxu0 %v3295_v54  ;;  %v3316_v54 = vld [vmem:[#allocation7 + $0x10c] ss:$12 sps:$4 sm:$0xff]  }
 0x6e3   : > { %2876 = vmatprep.subr.bf16.mxu0 %v3296_v55  ;;  %v3314_v55 = vld [vmem:[#allocation7 + $0x108] ss:$12 sps:$4 sm:$0xff]  }
 0x6e6   : > { %2877 = vmatpush3.bf16.msra.mxu0 %v3297_v56  ;;  %v3317_v56 = vld [vmem:[#allocation7 + $0x110] ss:$12 sps:$4 sm:$0xff]  }
 0x6e7   : > { %2878 = vmatprep.subr.bf16.mxu0 %v3298_v57  ;;  %v3320_v57 = vld [vmem:[#allocation7 + $0x124] ss:$12 sps:$4 sm:$0xff]  }
 0x6ea   : > { %2879 = vmatpush3.bf16.msra.mxu0 %v3299_v58  ;;  %v3318_v58 = vld [vmem:[#allocation7 + $0x120] ss:$12 sps:$4 sm:$0xff]  }
 0x6eb   : > { %2880 = vmatprep.subr.bf16.mxu0 %v3300_v59  ;;  %v3321_v59 = vld [vmem:[#allocation7 + $0x128] ss:$12 sps:$4 sm:$0xff]  }
 0x6ee   : > { %2881 = vmatpush3.bf16.msra.mxu0 %v3301_v60  ;;  %v3324_v60 = vld [vmem:[#allocation7 + $0x13c] ss:$12 sps:$4 sm:$0xff]  }
 0x6ef   : > { %3009 = vmatprep.subr.bf16.mxu0 %v3750_v3 }
 0x7a4   : > { %v1038_v2 = vpop.f32.mrb[12].mxu0 }
 0x7a5   : > { %v1039_v4 = vadd.f32 %v1038_v2, %v955_v1  ;;  %v3007_v5 = vpop.f32.mrb[13].mxu0 }
 0x7a6   : > { %v1041_v6 = vpop.f32.mrb[14].mxu0 }
 0x7a7   : > { %v3008_v7 = vpop.f32.mrb[15].mxu0  ;;  %v1044_v8 = vadd.f32 %v1039_v4, %v4105_v39  ;;  %v3271_v39 = vld [vmem:[#allocation10 + $0x30] ss:$8 sps:$4 sm:$0xff]  }
 0x7a8   : > { %1178 = vmatpush1.bf16.msra.mxu1 %v3271_v39 }
 0x7a9   : > { %1045 = vadd.xlane.f32.xlu1 %v1044_v8  ;;  %1179 = vmatprep.subr.bf16.mxu1 %v3276_v20 }
 0x7ac   : > { %1180 = vmatpush1.bf16.msra.mxu1 %v3274_v21 }
 0x7ad   : > { %1181 = vmatprep.subr.bf16.mxu1 %v3279_v22 }
 0x7b0   : > { %1182 = vmatpush1.bf16.msra.mxu1 %v3277_v23 }
 0x7b1   : > { %1183 = vmatprep.subr.bf16.mxu1 %v3282_v24 }
 0x7b4   : > { %1184 = vmatpush1.bf16.msra.mxu1 %v3280_v26 }
 0x7b5   : > { %1185 = vmatprep.subr.bf16.mxu1 %v3285_v27 }
 0x7b8   : > { %1186 = vmatpush1.bf16.msra.mxu1 %v3283_v28  ;;  %v4190_v28 = vsub.s32 3, %v4113_v42  ;;  %v3309_v42 = vld [vmem:[#allocation7 + $0xe0] ss:$12 sps:$4 sm:$0xff]  }
 0x7b9   : > { %1604 = vmatprep.subr.bf16.mxu1 %v3304_v40 }
 0x836   : > { %v1046_v15 = vpop.xlane.xlu1 %1045 }
 0x837   : > { %v1047_v16 = vmul.f32 0.0078125, %v1046_v15 }
 0x839   : > { %v1048_v17 = vsub.f32 %v1044_v8, %v1047_v16 }
 0x83b   : > { %v1049_v18 = vmul.f32 %v1048_v17, %v1048_v17 }
 0x83d   : > { %1050 = vadd.xlane.f32.xlu0 %v1049_v18 }
 0x8ca   : > { %v1051_v29 = vpop.xlane.xlu0 %1050 }
 0x8cb   : > { %v1052_v30 = vmul.f32 0.0078125, %v1051_v29 }
 0x8cd   : > { %v1053_v31 = vadd.f32 1e-12, %v1052_v30  ;;  %v1267_v30 = vrot.slane %v4122_v46, %v4190_v28  ;;  %v3312_v46 = vld [vmem:[#allocation7 + $0xf4] ss:$12 sps:$4 sm:$0xff]  }
 0x8cf   : > { %3400 = vrsqrt.f32 %v1053_v31 }
 0x8d9   : > { %v3401_v33 = vpop.eup %3400 }
 0x8da   : > { %v1055_v35 = vmul.f32 %v3401_v33, %v1048_v17 }
 0x8dc   : > { %v1060_v36 = vmul.f32 %v1059_v32, %v1055_v35 }
 0x8de   : > { %v4174_v37 = vadd.f32 %v1064_v34, %v1060_v36 }
 0x8e0   : > { %v1082_v38 = vpack.c.bf16 %v4174_v37, %v4174_v37 }
 0x8e2   : > { %1204 = vmatmul.mubr.bf16.vlgmr.msra.gmra.mrb[12].mxu1 %v1082_v38  ;;  %v3302_v38 = vld [vmem:[#allocation7 + $0xc0] ss:$12 sps:$4 sm:$0xff]  }
 0x8e3   : > { %1636 = vmatprep.mubr.bf16.mxu1 %v3751_v25  ;;  %1605 = vmatpush1.bf16.msra.mxu1 %v3302_v38 }
 0x8e4   : > { %1606 = vmatprep.subr.bf16.mxu1 %v3308_v47 }
 0x8e7   : > { %1607 = vmatpush1.bf16.msra.mxu1 %v3306_v48 }
 0x8e8   : > { %1608 = vmatprep.subr.bf16.mxu1 %v3312_v46 }
 0x8eb   : > { %1609 = vmatpush1.bf16.msra.mxu1 %v3310_v49 }
 0x8ec   : > { %1610 = vmatprep.subr.bf16.mxu1 %v3316_v54 }
 0x8ef   : > { %1611 = vmatpush1.bf16.msra.mxu1 %v3314_v55 }
 0x8f0   : > { %1612 = vmatprep.subr.bf16.mxu1 %v3320_v57 }
 0x8f3   : > { %1613 = vmatpush1.bf16.msra.mxu1 %v3318_v58 }
 0x8f4   : > { %1614 = vmatprep.subr.bf16.mxu1 %v3324_v60 }
 0x9b5   : > { %v1205_v1 = vpop.f32.mrb[12].mxu1 }
 0x9b6   : > { %v1206_v2 = vadd.f32 %v1205_v1, %v1086_v62  ;;  %v1207_v4 = vpop.f32.mrb[13].mxu1  ;;  %v3322_v62 = vld [vmem:[#allocation7 + $0x138] ss:$12 sps:$4 sm:$0xff]   ;;  %v3328_v1 = vld [vmem:[#allocation7 + $0x154] ss:$12 sps:$4 sm:$0xff]  }
 0x9b7   : > { %v1208_v5 = vadd.f32 %v1207_v4, %v1090_v63  ;;  %v1209_v6 = vpop.f32.mrb[14].mxu1  ;;  %v3325_v63 = vld [vmem:[#allocation7 + $0x140] ss:$12 sps:$4 sm:$0xff]   ;;  %1615 = vmatpush1.bf16.msra.mxu1 %v3322_v62  ;;  %v3329_v4 = vld [vmem:[#allocation7 + $0x158] ss:$12 sps:$4 sm:$0xff]  }
 0x9b8   : > { %v1212_v7 = vmul.f32 %v1206_v2, %v1206_v2  ;;  %v1210_v8 = vpop.f32.mrb[15].mxu1  ;;  %1616 = vmatprep.subr.bf16.mxu1 %v3328_v1  ;;  %v3330_v6 = vld [vmem:[#allocation7 + $0x168] ss:$12 sps:$4 sm:$0xff]  }
 0x9b9   : > { %v1213_v9 = vmul.f32 %v1208_v5, %v1208_v5 }
 0x9ba   : > { %v1214_v10 = vmul.f32 %v1212_v7, %v1206_v2  ;;  %v3333_v7 = vld [vmem:[#allocation7 + $0x170] ss:$12 sps:$4 sm:$0xff]  }
 0x9bb   : > { %v1215_v11 = vmul.f32 %v1213_v9, %v1208_v5 }
 0x9bc   : > { %v1216_v12 = vmul.f32 0.044715, %v1214_v10 }
 0x9bd   : > { %v1217_v13 = vmul.f32 0.044715, %v1215_v11  ;;  %v1419_v11 = vrot.slane %v4120_v45, %v4190_v28  ;;  %v4216_v45 = vld [vmem:[#allocation13 + $0x18] sm:$0xff] }
 0x9be   : > { %v1218_v14 = vadd.f32 %v1216_v12, %v1206_v2 }
 0x9bf   : > { %v1219_v15 = vadd.f32 %v1217_v13, %v1208_v5  ;;  %v1424_v13 = vrot.slane %v4118_v44, %v4190_v28  ;;  %v1467_v44 = vrot.slane %v4216_v45, %v4116_v43 }
 0x9c0   : > { %v1220_v16 = vmul.f32 0.7978846, %v1218_v14 }
 0x9c1   : > { %v1221_v17 = vmul.f32 0.7978846, %v1219_v15 }
 0x9c2   : > { %3402 = vtanh.f32 %v1220_v16 }
 0x9c3   : > { %3404 = vtanh.f32 %v1221_v17 }
 0x9cc   : > { %v3403_v18 = vpop.eup %3402 }
 0x9cd   : > { %v3405_v19 = vpop.eup %3404  ;;  %v1224_v39 = vadd.f32 1.0, %v3403_v18  ;;  %v4218_v18 = vld [vmem:[#allocation13 + $0x20] sm:$0xff] }
 0x9ce   : > { %v1225_v20 = vadd.f32 1.0, %v3405_v19  ;;  %v1471_v19 = vrot.slane %v4218_v18, %v4116_v43 }
 0x9cf   : > { %v1226_v21 = vmul.f32 0.5, %v1224_v39  ;;  %v4224_v39 = vld [vmem:[#allocation13 + $0x28] sm:$0xff] }
 0x9d0   : > { %v1227_v22 = vmul.f32 0.5, %v1225_v20 }
 0x9d1   : > { %v1228_v23 = vmul.f32 %v1226_v21, %v1206_v2  ;;  %v3326_v2 = vld [vmem:[#allocation7 + $0x150] ss:$12 sps:$4 sm:$0xff]  }
 0x9d2   : > { %v1229_v24 = vmul.f32 %v1227_v22, %v1208_v5  ;;  %v3332_v5 = vld [vmem:[#allocation7 + $0x16c] ss:$12 sps:$4 sm:$0xff]   ;;  %1617 = vmatpush1.bf16.msra.mxu1 %v3326_v2 }
 0x9d3   : > { %v1262_v27 = vpack.c.bf16 %v1228_v23, %v1228_v23  ;;  %1618 = vmatprep.subr.bf16.mxu1 %v3332_v5 }
 0x9d4   : > { %v1263_v26 = vpack.c.bf16 %v1229_v24, %v1229_v24 }
 0x9d6   : > { %1396 = vmatprep.mubr.bf16.mxu0 %v1263_v26  ;;  %1619 = vmatpush1.bf16.msra.mxu1 %v3330_v6  ;;  %v1475_v26 = vrot.slane %v4224_v39, %v4116_v43 }
 0x9d7   : > { %1397 = vmatmul.mubr.bf16.vlgmr.msra.gmra.mrb[16].mxu0 %v1262_v27  ;;  %3029 = vmatprep.subr.bf16.mxu1 %v3750_v3 }
 0x9d8   : > { %3025 = vmatprep.mubr.msk.bf16.mxu0 %vm3752_vm0, %v3750_v3  ;;  %3010 = vmatpush3.bf16.msra.mxu0 %v3305_v41 }
 0x9d9   : > { %3011 = vmatprep.subr.bf16.mxu0 %v3750_v3 }
 0x9dc   : > { %3012 = vmatpush3.bf16.msra.mxu0 %v3309_v42 }
 0x9dd   : > { %3013 = vmatprep.subr.bf16.mxu0 %v3750_v3 }
 0x9e0   : > { %3014 = vmatpush3.bf16.msra.mxu0 %v3313_v53 }
 0x9e1   : > { %3015 = vmatprep.subr.bf16.mxu0 %v3750_v3 }
 0x9e4   : > { %3016 = vmatpush3.bf16.msra.mxu0 %v3317_v56 }
 0x9e5   : > { %3017 = vmatprep.subr.bf16.mxu0 %v3750_v3 }
 0x9e8   : > { %3018 = vmatpush3.bf16.msra.mxu0 %v3321_v59 }
 0x9e9   : > { %3019 = vmatprep.subr.bf16.mxu0 %v3750_v3 }
 0x9ec   : > { %3020 = vmatpush3.bf16.msra.mxu0 %v3325_v63 }
 0x9ed   : > { %3021 = vmatprep.subr.bf16.mxu0 %v3750_v3 }
 0x9f0   : > { %3022 = vmatpush3.bf16.msra.mxu0 %v3329_v4 }
 0x9f1   : > { %3023 = vmatprep.subr.bf16.mxu0 %v3750_v3 }
 0x9f4   : > { %3024 = vmatpush3.bf16.msra.mxu0 %v3333_v7 }
 0x9f5   : > { %3053 = vmatprep.subr.bf16.mxu0 %v3750_v3 }
 0xaaa   : > { %v2882_v29 = vpop.f32.mrb[16].mxu0 }
 0xaab   : > { %v2883_v31 = vpop.f32.mrb[17].mxu0 }
 0xaac   : > { %v2884_v32 = vadd.f32 %v2883_v31, %v2882_v29  ;;  %v2885_v33 = vpop.f32.mrb[18].mxu0 }
 0xaad   : > { %v2886_v34 = vpop.f32.mrb[19].mxu0 }
 0xaae   : > { %v1399_v35 = vadd.f32 %v2884_v32, %v1267_v30 }
 0xab0   : > { %v1404_v36 = vadd.f32 %v1399_v35, %v4174_v37 }
 0xab2   : > { %1405 = vadd.xlane.f32.xlu1 %v1404_v36 }
 0xb3f   : > { %v1406_v37 = vpop.xlane.xlu1 %1405 }
 0xb40   : > { %v1407_v50 = vmul.f32 0.0078125, %v1406_v37 }
 0xb42   : > { %v1408_v51 = vsub.f32 %v1404_v36, %v1407_v50 }
 0xb44   : > { %v1409_v52 = vmul.f32 %v1408_v51, %v1408_v51 }
 0xb46   : > { %1410 = vadd.xlane.f32.xlu1 %v1409_v52 }
 0xbd3   : > { %v1411_v8 = vpop.xlane.xlu1 %1410 }
 0xbd4   : > { %v1412_v9 = vmul.f32 0.0078125, %v1411_v8 }
 0xbd6   : > { %v1413_v10 = vadd.f32 1e-12, %v1412_v9 }
 0xbd8   : > { %3406 = vrsqrt.f32 %v1413_v10 }
 0xbe2   : > { %v3407_v12 = vpop.eup %3406 }
 0xbe3   : > { %v1415_v14 = vmul.f32 %v3407_v12, %v1408_v51 }
 0xbe5   : > { %v1420_v15 = vmul.f32 %v1419_v11, %v1415_v14 }
 0xbe7   : > { %v4208_v16 = vadd.f32 %v1424_v13, %v1420_v15 }
 0xbe9   : > { %v1463_v17 = vpack.c.bf16 %v4208_v16, %v4208_v16 }
 0xbeb   : > { %1637 = vmatmul.mubr.bf16.vlgmr.msra.gmra.mrb[16].mxu1 %v1463_v17  ;;  %3026 = vmatmul.mubr.bf16.vlgmr.msra.gmra.mrb[20].mxu0 %v1463_v17 }
 0xbec   : > { %3031 = vmatprep.mubr.msk.bf16.mxu1 %vm3752_vm0, %v3750_v3  ;;  %3069 = vmatprep.mubr.msk.bf16.mxu0 %vm3752_vm0, %v3750_v3 }
 0xcbe   : > { %v1638_v20 = vpop.f32.mrb[16].mxu1  ;;  %v1679_v21 = vpop.f32.mrb[20].mxu0 }
 0xcbf   : > { %v1639_v22 = vadd.f32 %v1638_v20, %v1467_v44  ;;  %v1640_v23 = vpop.f32.mrb[17].mxu1  ;;  %v3027_v24 = vpop.f32.mrb[21].mxu0  ;;  %v1680_v35 = vadd.f32 %v1679_v21, %v1475_v26  ;;  %v3334_v21 = vld [vmem:[#allocation8 + $0x40] sm:$0xff]  }
 0xcc0   : > { %v1641_v27 = vadd.f32 %v1640_v23, %v1471_v19  ;;  %v1642_v29 = vpop.f32.mrb[18].mxu1  ;;  %v1682_v30 = vpop.f32.mrb[22].mxu0  ;;  %3054 = vmatpush3.bf16.msra.mxu0 %v3334_v21  ;;  %v3336_v23 = vld [vmem:[#allocation8 + $0x50] sm:$0xff]   ;;  %v3337_v24 = vld [vmem:[#allocation8 + $0x58] sm:$0xff]   ;;  %v3338_v26 = vld [vmem:[#allocation8 + $0x60] sm:$0xff]  }
 0xcc1   : > { %v1685_v31 = vpack.c.bf16 %v1639_v22, %v1639_v22  ;;  %v1643_v32 = vpop.f32.mrb[19].mxu1  ;;  %v3028_v33 = vpop.f32.mrb[23].mxu0  ;;  %v1687_v38 = vpack.c.bf16 %v1680_v35, %v1680_v35  ;;  %v3335_v22 = vld [vmem:[#allocation8 + $0x48] sm:$0xff]   ;;  %3055 = vmatprep.subr.bf16.mxu0 %v3750_v3  ;;  %v3341_v29 = vld [vmem:[#allocation8 + $0x78] sm:$0xff]  }
 0xcc2   : > { %v1686_v34 = vpack.c.bf16 %v1641_v27, %v1641_v27  ;;  %v3339_v27 = vld [vmem:[#allocation8 + $0x68] sm:$0xff]   ;;  %v3372_v21 = vld [vmem:[#allocation11 + $0xd8] sm:$0xff]  }
 0xcc3   : > { %1794 = vrot.lane.b32.xlu0 %v1685_v31, %s3753_s12  ;;  %v1751_v40 = vsel %vm772_vm1, %v1687_v38, 0 }
 0xcc4   : > { %v1692_v36 = vsel %vm708_vm2, %v1686_v34, 0  ;;  %3056 = vmatpush3.bf16.msra.mxu0 %v3335_v22  ;;  %v3373_v22 = vld [vmem:[#allocation11 + $0x98] sm:$0xff]  }
 0xcc5   : > { %3030 = vmatpush3.bf16.xpose.msra.mxu1 %v1692_v36  ;;  %3057 = vmatprep.subr.bf16.mxu0 %v3750_v3 }
 0xcc6   : > { %3035 = vmatprep.subr.bf16.mxu1 %v3750_v3 }
 0xcc8   : > { %3058 = vmatpush3.bf16.msra.mxu0 %v3336_v23  ;;  %v3374_v23 = vld [vmem:[#allocation11 + $0xe0] sm:$0xff]  }
 0xcc9   : > { %3059 = vmatprep.subr.bf16.mxu0 %v3750_v3 }
 0xccc   : > { %3032 = vmatmul.mubr.msk.bf16.vlgmr.msra.gmra.mrb[20].mxu1 %vm708_vm2, %v1685_v31  ;;  %3060 = vmatpush3.bf16.msra.mxu0 %v3337_v24  ;;  %v3375_v24 = vld [vmem:[#allocation11 + $0xa0] sm:$0xff]  }
 0xccd   : > { %3036 = vmatpush3.bf16.msra.mxu1 %v1751_v40  ;;  %3037 = vmatprep.mubr.msk.bf16.mxu1 %vm3752_vm0, %v3750_v3 }
 0xcce   : > { %3041 = vmatprep.subr.bf16.mxu1 %v3750_v3  ;;  %3061 = vmatprep.subr.bf16.mxu0 %v3750_v3 }
 0xcd0   : > { %3062 = vmatpush3.bf16.msra.mxu0 %v3338_v26  ;;  %v3376_v26 = vld [vmem:[#allocation11 + $0xe8] sm:$0xff]  }
 0xcd1   : > { %3063 = vmatprep.subr.bf16.mxu0 %v3750_v3 }
 0xcd4   : > { %3064 = vmatpush3.bf16.msra.mxu0 %v3339_v27  ;;  %v3377_v27 = vld [vmem:[#allocation11 + $0xa8] sm:$0xff]  }
 0xcd5   : > { %3065 = vmatprep.subr.bf16.mxu0 %v3750_v3 }
 0xd35   : > { %v1795_v59 = vpop.permute.xlu0 %1794 }
 0xd9f   : > { %v1728_v43 = vpop.f32.mrb[20].mxu1 }
 0xda0   : > { %v1734_v41 = vmul.f32 0.125, %v1728_v43  ;;  %v3033_v47 = vpop.f32.mrb[21].mxu1 }
 0xda1   : > { %v1731_v42 = vpop.f32.mrb[22].mxu1 }
 0xda2   : > { %v3034_v48 = vpop.f32.mrb[23].mxu1  ;;  %v1735_v46 = vsel %vm756_vm3, %v1734_v41, -inf }
 0xda3   : > { %1736 = vmax.xlane.f32.xlu1 %v1735_v46  ;;  %v3342_v46 = vld [vmem:[#allocation10 + $0x80] ss:$8 sps:$4 sm:$0xff]  }
 0xe30   : > { %v1737_v49 = vpop.xlane.xlu1 %1736 }
 0xe31   : > { %v1738_v37 = vsub.f32 %v1734_v41, %v1737_v49  ;;  %v3344_v49 = vld [vmem:[#allocation10 + $0x84] ss:$8 sps:$4 sm:$0xff]  }
 0xe33   : > { %v1739_v50 = vmul.f32 1.442695, %v1738_v37  ;;  %v3347_v37 = vld [vmem:[#allocation10 + $0x94] ss:$8 sps:$4 sm:$0xff]  }
 0xe35   : > { %3408 = vpow2.f32 %v1739_v50  ;;  %v3345_v50 = vld [vmem:[#allocation10 + $0x90] ss:$8 sps:$4 sm:$0xff]  }
 0xe3f   : > { %v3409_v51 = vpop.eup %3408 }
 0xe40   : > { %v1741_v52 = vsel %vm756_vm3, %v3409_v51, 0.0 }
 0xe41   : > { %1742 = vadd.xlane.f32.xlu1 %v1741_v52  ;;  %v3348_v52 = vld [vmem:[#allocation10 + $0xa0] ss:$8 sps:$4 sm:$0xff]  }
 0xe52   : > { %1797 = vrot.lane.b32.xlu1 %v1686_v34, %s3753_s12 }
 0xece   : > { %v1743_v53 = vpop.xlane.xlu1 %1742 }
 0xecf   : > { %3410 = vrcp.f32 %v1743_v53 }
 0xed2   : > { %v1798_v56 = vpop.permute.xlu1 %1797 }
 0xed3   : > { %v1803_v58 = vsel %vm708_vm2, %v1798_v56, 0 }
 0xed9   : > { %v3411_v54 = vpop.eup %3410 }
 0xeda   : > { %v1745_v55 = vmul.f32 %v3411_v54, %v3409_v51  ;;  %v3350_v51 = vld [vmem:[#allocation10 + $0xa4] ss:$8 sps:$4 sm:$0xff]  }
 0xedc   : > { %v1746_v57 = vpack.c.bf16 %v1745_v55, %v1745_v55 }
 0xede   : > { %3038 = vmatmul.mubr.msk.bf16.vlgmr.msra.gmra.mrb[24].mxu1 %vm756_vm3, %v1746_v57  ;;  %v3353_v57 = vld [vmem:[#allocation10 + $0xb4] ss:$8 sps:$4 sm:$0xff]  }
 0xedf   : > { %3042 = vmatpush3.bf16.xpose.msra.mxu1 %v1803_v58  ;;  %3043 = vmatprep.mubr.msk.bf16.mxu1 %vm3752_vm0, %v3750_v3  ;;  %v3356_v58 = vld [vmem:[#allocation10 + $0xc4] ss:$8 sps:$4 sm:$0xff]  }
 0xee0   : > { %3047 = vmatprep.subr.bf16.mxu1 %v3750_v3 }
 0xee6   : > { %3044 = vmatmul.mubr.msk.bf16.vlgmr.msra.gmra.mrb[28].mxu1 %vm708_vm2, %v1795_v59  ;;  %v3354_v59 = vld [vmem:[#allocation10 + $0xc0] ss:$8 sps:$4 sm:$0xff]  }
 0xee7   : > { %3049 = vmatprep.mubr.msk.bf16.mxu1 %vm3752_vm0, %v3750_v3 }
 0xfb1   : > { %v1787_v60 = vpop.f32.mrb[24].mxu1 }
 0xfb2   : > { %v3039_v62 = vpop.f32.mrb[25].mxu1 }
 0xfb3   : > { %v1790_v63 = vpop.f32.mrb[26].mxu1  ;;  %v3357_v62 = vld [vmem:[#allocation10 + $0xd0] ss:$8 sps:$4 sm:$0xff]  }
 0xfb4   : > { %v3040_v1 = vpop.f32.mrb[27].mxu1  ;;  %v3362_v63 = vld [vmem:[#allocation10 + $0xe4] ss:$8 sps:$4 sm:$0xff]  }
 0xfb5   : > { %v3360_v1 = vld [vmem:[#allocation10 + $0xe0] ss:$8 sps:$4 sm:$0xff]  }
 0xfb9   : > { %v1839_v2 = vpop.f32.mrb[28].mxu1 }
 0xfba   : > { %v1845_v4 = vmul.f32 0.125, %v1839_v2  ;;  %v3045_v5 = vpop.f32.mrb[29].mxu1  ;;  %v3365_v2 = vld [vmem:[#allocation10 + $0xf4] ss:$8 sps:$4 sm:$0xff]  }
 0xfbb   : > { %v1842_v6 = vpop.f32.mrb[30].mxu1 }
 0xfbc   : > { %v3046_v7 = vpop.f32.mrb[31].mxu1  ;;  %v1846_v8 = vsel %vm756_vm3, %v1845_v4, -inf }
 0xfbd   : > { %1847 = vmax.xlane.f32.xlu1 %v1846_v8  ;;  %v2037_v8 = vrot.slane %v4218_v18, %v4165_v0 }
 0xfce   : > { %1859 = vrot.lane.b32.xlu1 %v1687_v38, %s3753_s12  ;;  %v1933_v38 = vrot.slane %v4216_v45, %v4165_v0 }
0x104a   : > { %v1848_v9 = vpop.xlane.xlu1 %1847 }
0x104b   : > { %v1849_v10 = vsub.f32 %v1845_v4, %v1848_v9  ;;  %v3363_v4 = vld [vmem:[#allocation10 + $0xf0] ss:$8 sps:$4 sm:$0xff]  }
0x104d   : > { %v1850_v11 = vmul.f32 1.442695, %v1849_v10  ;;  %v2042_v10 = vrot.slane %v4224_v39, %v4165_v0  ;;  %v3370_v0 = vld [vmem:[#allocation11 + $0xd0] sm:$0xff]  }
0x104e   : > { %v1860_v12 = vpop.permute.xlu1 %1859 }
0x104f   : > { %3412 = vpow2.f32 %v1850_v11  ;;  %v1865_v13 = vsel %vm772_vm1, %v1860_v12, 0 }
0x1050   : > { %3048 = vmatpush3.bf16.msra.mxu1 %v1865_v13 }
0x1051   : > { %2150 = vmatprep.subr.bf16.mxu1 %v3344_v49 }
0x1059   : > { %v3413_v14 = vpop.eup %3412 }
0x105a   : > { %v1852_v15 = vsel %vm756_vm3, %v3413_v14, 0.0 }
0x105b   : > { %1853 = vadd.xlane.f32.xlu0 %v1852_v15  ;;  %v3366_v15 = vld [vmem:[#allocation11 + $0xc0] sm:$0xff]  }
0x10e8   : > { %v1854_v17 = vpop.xlane.xlu0 %1853 }
0x10e9   : > { %3414 = vrcp.f32 %v1854_v17  ;;  %v3367_v17 = vld [vmem:[#allocation11 + $0x80] sm:$0xff]  }
0x10f3   : > { %v3415_v44 = vpop.eup %3414 }
0x10f4   : > { %v1856_v19 = vmul.f32 %v3415_v44, %v3413_v14  ;;  %v3368_v44 = vld [vmem:[#allocation11 + $0xc8] sm:$0xff]  }
0x10f6   : > { %v1857_v20 = vpack.c.bf16 %v1856_v19, %v1856_v19  ;;  %v3369_v19 = vld [vmem:[#allocation11 + $0x88] sm:$0xff]  }
0x10f8   : > { %3050 = vmatmul.mubr.msk.bf16.vlgmr.msra.gmra.mrb[32].mxu1 %vm756_vm3, %v1857_v20  ;;  %v3371_v20 = vld [vmem:[#allocation11 + $0x90] sm:$0xff]  }
0x10f9   : > { %2182 = vmatprep.mubr.bf16.mxu1 %v3751_v25  ;;  %v3340_v25 = vld [vmem:[#allocation8 + $0x70] sm:$0xff]   ;;  %2151 = vmatpush1.bf16.msra.mxu1 %v3342_v46 }
0x10fa   : > { %3066 = vmatpush3.bf16.msra.mxu0 %v3340_v25  ;;  %2152 = vmatprep.subr.bf16.mxu1 %v3347_v37  ;;  %v3378_v25 = vld [vmem:[#allocation11 + $0xf0] sm:$0xff]  }
0x10fb   : > { %3067 = vmatprep.subr.bf16.mxu0 %v3750_v3 }
0x10fd   : > { %2153 = vmatpush1.bf16.msra.mxu1 %v3345_v50 }
0x10fe   : > { %3068 = vmatpush3.bf16.msra.mxu0 %v3341_v29  ;;  %2154 = vmatprep.subr.bf16.mxu1 %v3350_v51  ;;  %v3379_v29 = vld [vmem:[#allocation11 + $0xb0] sm:$0xff]  }
0x10ff   : > { %2914 = vmatprep.subr.bf16.mxu0 %v3366_v15  ;;  %v3385_v15 = vld [vmem:[#allocation14 + $0x18] sm:$0xff]  }
0x1101   : > { %2155 = vmatpush1.bf16.msra.mxu1 %v3348_v52 }
0x1102   : > { %2156 = vmatprep.subr.bf16.mxu1 %v3353_v57 }
0x11cb   : > { %v1901_v30 = vpop.f32.mrb[32].mxu1 }
0x11cc   : > { %1908 = vrot.lane.b32.xlu0 %v1901_v30, %s3753_s12  ;;  %v3051_v31 = vpop.f32.mrb[33].mxu1  ;;  %v3380_v30 = vld [vmem:[#allocation11 + $0xf8] sm:$0xff]  }
0x11cd   : > { %v1904_v32 = vpop.f32.mrb[34].mxu1  ;;  %v3381_v31 = vld [vmem:[#allocation11 + $0xb8] sm:$0xff]  }
0x11ce   : > { %v3052_v33 = vpop.f32.mrb[35].mxu1  ;;  %v2065_v32 = vrot.slane %v4216_v45, %v4181_v61 }
0x11cf   : > { %v2069_v33 = vrot.slane %v4218_v18, %v4181_v61 }
0x123e   : > { %v1909_v34 = vpop.permute.xlu0 %1908 }
0x123f   : > { %v1911_v35 = vsel %vm708_vm2, %v1787_v60, %v1909_v34  ;;  %v3359_v60 = vld [vmem:[#allocation10 + $0xd4] ss:$8 sps:$4 sm:$0xff]  }
0x1240   : > { %v1929_v36 = vpack.c.bf16 %v1911_v35, %v1911_v35 }
0x1242   : > { %3070 = vmatmul.mubr.bf16.vlgmr.msra.gmra.mrb[24].mxu0 %v1929_v36 }
0x1243   : > { %2915 = vmatpush3.bf16.msra.mxu0 %v3367_v17  ;;  %v3387_v17 = vld [vmem:[#allocation14 + $0x28] sm:$0xff]  }
0x1244   : > { %2916 = vmatprep.subr.bf16.mxu0 %v3368_v44  ;;  %v3388_v44 = vld [vmem:[#allocation14 + $0x30] sm:$0xff]  }
0x1247   : > { %2917 = vmatpush3.bf16.msra.mxu0 %v3369_v19  ;;  %v3389_v19 = vld [vmem:[#allocation14 + $0x38] sm:$0xff]  }
0x1248   : > { %2918 = vmatprep.subr.bf16.mxu0 %v3370_v0 }
0x124b   : > { %2919 = vmatpush3.bf16.msra.mxu0 %v3371_v20 }
0x124c   : > { %2920 = vmatprep.subr.bf16.mxu0 %v3372_v21 }
0x124f   : > { %2921 = vmatpush3.bf16.msra.mxu0 %v3373_v22  ;;  %v2399_v22 = vrot.slane %v4218_v18, %v4190_v28 }
0x1250   : > { %2922 = vmatprep.subr.bf16.mxu0 %v3374_v23 }
0x1253   : > { %2923 = vmatpush3.bf16.msra.mxu0 %v3375_v24  ;;  %v2404_v24 = vrot.slane %v4224_v39, %v4190_v28 }
0x1254   : > { %2924 = vmatprep.subr.bf16.mxu0 %v3376_v26 }
0x1257   : > { %2925 = vmatpush3.bf16.msra.mxu0 %v3377_v27 }
0x1258   : > { %2926 = vmatprep.subr.bf16.mxu0 %v3378_v25 }
0x125b   : > { %2927 = vmatpush3.bf16.msra.mxu0 %v3379_v29 }
0x125c   : > { %2928 = vmatprep.subr.bf16.mxu0 %v3380_v30 }
0x125f   : > { %2929 = vmatpush3.bf16.msra.mxu0 %v3381_v31 }
0x1315   : > { %v2016_v40 = vpop.f32.mrb[24].mxu0 }
0x1316   : > { %v2017_v43 = vadd.f32 %v2016_v40, %v1933_v38  ;;  %v3071_v41 = vpop.f32.mrb[25].mxu0 }
0x1317   : > { %v2019_v47 = vpop.f32.mrb[26].mxu0 }
0x1318   : > { %v3072_v42 = vpop.f32.mrb[27].mxu0  ;;  %v2022_v48 = vadd.f32 %v2017_v43, %v4208_v16  ;;  %v3351_v16 = vld [vmem:[#allocation10 + $0xb0] ss:$8 sps:$4 sm:$0xff]  }
0x1319   : > { %2157 = vmatpush1.bf16.msra.mxu1 %v3351_v16 }
0x131a   : > { %2023 = vadd.xlane.f32.xlu1 %v2022_v48  ;;  %2158 = vmatprep.subr.bf16.mxu1 %v3356_v58 }
0x131d   : > { %2159 = vmatpush1.bf16.msra.mxu1 %v3354_v59 }
0x131e   : > { %2160 = vmatprep.subr.bf16.mxu1 %v3359_v60 }
0x1321   : > { %2161 = vmatpush1.bf16.msra.mxu1 %v3357_v62 }
0x1322   : > { %2162 = vmatprep.subr.bf16.mxu1 %v3362_v63  ;;  %v2247_v63 = vrot.slane %v4216_v45, %v4190_v28 }
0x1325   : > { %2163 = vmatpush1.bf16.msra.mxu1 %v3360_v1 }
0x1326   : > { %2164 = vmatprep.subr.bf16.mxu1 %v3365_v2 }
0x1329   : > { %2165 = vmatpush1.bf16.msra.mxu1 %v3363_v4 }
0x132a   : > { %3073 = vmatprep.subr.bf16.mxu1 %v3750_v3 }
0x13a7   : > { %v2024_v53 = vpop.xlane.xlu1 %2023 }
0x13a8   : > { %v2025_v54 = vmul.f32 0.0078125, %v2024_v53 }
0x13aa   : > { %v2026_v55 = vsub.f32 %v2022_v48, %v2025_v54 }
0x13ac   : > { %v2027_v56 = vmul.f32 %v2026_v55, %v2026_v55 }
0x13ae   : > { %2028 = vadd.xlane.f32.xlu0 %v2027_v56 }
0x143b   : > { %v2029_v5 = vpop.xlane.xlu0 %2028 }
0x143c   : > { %v2030_v6 = vmul.f32 0.0078125, %v2029_v5 }
0x143e   : > { %v2031_v7 = vadd.f32 1e-12, %v2030_v6 }
0x1440   : > { %3416 = vrsqrt.f32 %v2031_v7 }
0x144a   : > { %v3417_v9 = vpop.eup %3416 }
0x144b   : > { %v2033_v11 = vmul.f32 %v3417_v9, %v2026_v55  ;;  %v3383_v9 = vld [vmem:[#allocation14 + $0x8] sm:$0xff]  }
0x144d   : > { %v2038_v12 = vmul.f32 %v2037_v8, %v2033_v11  ;;  %v3382_v8 = vld [vmem:[#allocation14] sm:$0xff]  }
0x144f   : > { %v4270_v13 = vadd.f32 %v2042_v10, %v2038_v12 }
0x1451   : > { %v2061_v14 = vpack.c.bf16 %v4270_v13, %v4270_v13 }
0x1453   : > { %2183 = vmatmul.mubr.bf16.vlgmr.msra.gmra.mrb[36].mxu1 %v2061_v14  ;;  %v3384_v14 = vld [vmem:[#allocation14 + $0x10] sm:$0xff]  }
0x1454   : > { %3089 = vmatprep.mubr.msk.bf16.mxu1 %vm3752_vm0, %v3750_v3  ;;  %3074 = vmatpush3.bf16.msra.mxu1 %v3382_v8 }
0x1455   : > { %3075 = vmatprep.subr.bf16.mxu1 %v3750_v3 }
0x1458   : > { %3076 = vmatpush3.bf16.msra.mxu1 %v3383_v9 }
0x1459   : > { %3077 = vmatprep.subr.bf16.mxu1 %v3750_v3 }
0x145c   : > { %3078 = vmatpush3.bf16.msra.mxu1 %v3384_v14 }
0x145d   : > { %3079 = vmatprep.subr.bf16.mxu1 %v3750_v3 }
0x1460   : > { %3080 = vmatpush3.bf16.msra.mxu1 %v3385_v15 }
0x1461   : > { %3081 = vmatprep.subr.bf16.mxu1 %v3750_v3 }
0x1526   : > { %v2184_v34 = vpop.f32.mrb[36].mxu1 }
0x1527   : > { %v2185_v35 = vadd.f32 %v2184_v34, %v2065_v32  ;;  %v2186_v36 = vpop.f32.mrb[37].mxu1 }
0x1528   : > { %v2187_v38 = vadd.f32 %v2186_v36, %v2069_v33  ;;  %v2188_v40 = vpop.f32.mrb[38].mxu1 }
0x1529   : > { %v2191_v43 = vmul.f32 %v2185_v35, %v2185_v35  ;;  %v2189_v41 = vpop.f32.mrb[39].mxu1 }
0x152a   : > { %v2192_v47 = vmul.f32 %v2187_v38, %v2187_v38 }
0x152b   : > { %v2193_v42 = vmul.f32 %v2191_v43, %v2185_v35 }
0x152c   : > { %v2194_v48 = vmul.f32 %v2192_v47, %v2187_v38 }
0x152d   : > { %v2195_v46 = vmul.f32 0.044715, %v2193_v42 }
0x152e   : > { %v2196_v49 = vmul.f32 0.044715, %v2194_v48 }
0x152f   : > { %v2197_v37 = vadd.f32 %v2195_v46, %v2185_v35 }
0x1530   : > { %v2198_v50 = vadd.f32 %v2196_v49, %v2187_v38 }
0x1531   : > { %v2199_v51 = vmul.f32 0.7978846, %v2197_v37 }
0x1532   : > { %v2200_v52 = vmul.f32 0.7978846, %v2198_v50 }
0x1533   : > { %3418 = vtanh.f32 %v2199_v51 }
0x1534   : > { %3420 = vtanh.f32 %v2200_v52 }
0x153d   : > { %v3419_v53 = vpop.eup %3418 }
0x153e   : > { %v3421_v61 = vpop.eup %3420  ;;  %v2203_v54 = vadd.f32 1.0, %v3419_v53 }
0x153f   : > { %v2204_v55 = vadd.f32 1.0, %v3421_v61 }
0x1540   : > { %v2205_v56 = vmul.f32 0.5, %v2203_v54 }
0x1541   : > { %v2206_v57 = vmul.f32 0.5, %v2204_v55 }
0x1542   : > { %v2207_v16 = vmul.f32 %v2205_v56, %v2185_v35 }
0x1543   : > { %v2208_v58 = vmul.f32 %v2206_v57, %v2187_v38 }
0x1544   : > { %v2242_v60 = vpack.c.bf16 %v2207_v16, %v2207_v16 }
0x1545   : > { %v2243_v59 = vpack.c.bf16 %v2208_v58, %v2208_v58 }
0x1547   : > { %2376 = vmatprep.mubr.bf16.mxu0 %v2243_v59 }
0x1548   : > { %2377 = vmatmul.mubr.bf16.vlgmr.msra.gmra.mrb[28].mxu0 %v2242_v60 }
0x161b   : > { %v2930_v62 = vpop.f32.mrb[28].mxu0 }
0x161c   : > { %v2931_v1 = vpop.f32.mrb[29].mxu0 }
0x161d   : > { %v2932_v2 = vadd.f32 %v2931_v1, %v2930_v62  ;;  %v2933_v4 = vpop.f32.mrb[30].mxu0 }
0x161e   : > { %v2934_v5 = vpop.f32.mrb[31].mxu0 }
0x161f   : > { %v2379_v6 = vadd.f32 %v2932_v2, %v2247_v63 }
0x1621   : > { %v2384_v7 = vadd.f32 %v2379_v6, %v4270_v13  ;;  %v3386_v13 = vld [vmem:[#allocation14 + $0x20] sm:$0xff]  }
0x1622   : > { %3082 = vmatpush3.bf16.msra.mxu1 %v3386_v13 }
0x1623   : > { %2385 = vadd.xlane.f32.xlu1 %v2384_v7  ;;  %3083 = vmatprep.subr.bf16.mxu1 %v3750_v3 }
0x1626   : > { %3084 = vmatpush3.bf16.msra.mxu1 %v3387_v17 }
0x1627   : > { %3085 = vmatprep.subr.bf16.mxu1 %v3750_v3 }
0x162a   : > { %3086 = vmatpush3.bf16.msra.mxu1 %v3388_v44 }
0x162b   : > { %3087 = vmatprep.subr.bf16.mxu1 %v3750_v3  ;;  %v2827_v3 = vld [vmem:[#allocation5 + $0x2] ss:$0 sm:$0xff] }
0x162e   : > { %3088 = vmatpush3.bf16.msra.mxu1 %v3389_v19 }
0x16b0   : > { %v2386_v10 = vpop.xlane.xlu1 %2385 }
0x16b1   : > { %v2387_v11 = vmul.f32 0.0078125, %v2386_v10 }
0x16b3   : > { %v2388_v12 = vsub.f32 %v2384_v7, %v2387_v11 }
0x16b5   : > { %v2389_v45 = vmul.f32 %v2388_v12, %v2388_v12 }
0x16b7   : > { %2390 = vadd.xlane.f32.xlu1 %v2389_v45 }
0x1744   : > { %v2391_v0 = vpop.xlane.xlu1 %2390 }
0x1745   : > { %v2392_v20 = vmul.f32 0.0078125, %v2391_v0 }
0x1747   : > { %v2393_v21 = vadd.f32 1e-12, %v2392_v20 }
0x1749   : > { %3422 = vrsqrt.f32 %v2393_v21 }
0x1753   : > { %v3423_v23 = vpop.eup %3422 }
0x1754   : > { %v2395_v26 = vmul.f32 %v3423_v23, %v2388_v12 }
0x1756   : > { %v2400_v27 = vmul.f32 %v2399_v22, %v2395_v26 }
0x1758   : > { %v2405_v25 = vadd.f32 %v2404_v24, %v2400_v27 }
0x175a   : > { %v2422_v29 = vpack.c.bf16 %v2405_v25, %v2405_v25 }
0x175c   : > { %3090 = vmatmul.mubr.bf16.vlgmr.msra.gmra.mrb[40].mxu1 %v2422_v29 }
0x182f   : > { %v2509_v30 = vpop.f32.mrb[40].mxu1 }
0x1830   : > { %v2510_v31 = vadd.f32 %v2827_v3, %v2509_v30  ;;  %v3091_v32 = vpop.f32.mrb[41].mxu1 }
0x1831   : > { %v2512_v28 = vpop.f32.mrb[42].mxu1 }
0x1832   : > { %2515 = vst [vmem:[%s420_s9] sm:$0xff] %v2510_v31  ;;  %v3092_v18 = vpop.f32.mrb[43].mxu1 }
0x1833   : > { %3663 = shalt.err (!%p3660_p0)
}
0x1834   : > { %s3664_s21 = scalar_lea.hbm %s4300_s20, 128  ;;  %s3668_s24 = scalar_lea.hbm %s4352_s8, 256 }
0x1835   : > { %p3665_p2 = scmp.ne.s32.totalorder %s4300_s20, %s3664_s21  ;;  %p3669_p12 = scmp.lt.u32.totalorder %s4300_s20, %s4352_s8 }
0x1836   : > { %p3670_p11 = scmp.lt.u32.totalorder %s3668_s24, %s3664_s21  ;;  %p3672_p5 = scmp.lt.u32.totalorder %s3664_s21, %s4300_s20 }
0x1837   : > { %p3666_p8 = pnand %p3665_p2, %p4377_p7 }
0x1838   : > { %p3671_p13 = por %p3670_p11, %p3669_p12 }
0x1839   : > { %p3667_p10 = pneg %p3666_p8 }
0x183a   : > { %p3673_p4 = por %p3672_p5, %p3671_p13 }
0x183c   : > { %p3674_p1 = pnand %p3673_p4, %p3667_p10 }
0x183e   : > { %3677 = shalt.err (!%p3674_p1)
}
0x183f   : > { %3123 = dma.vmem_to_hbm [thread:$0]  (%p4377_p7), %s4302_s26, 128, %s4300_s20, %s2517_s11  }
0x1840 PF: > { %s2542_s13 = sand.u32 1, %s3720_s27   ;;  %p4378_p3 = scmp.ne.s32.totalorder %s4366_s17, 0 }
0x1841   : > { %p4379_p9 = scmp.ge.s32.totalorder %s3732_s30, 2  ;;  %s2543_s16 = scalar_lea.sflag [#allocation4], %s2542_s13 }
0x1843   : > { %p3152_p6 = pnand %p4379_p9, %p4378_p3 }
0x1845   : > { %3715 = dma.done.wait (!%p3152_p6), %s2543_s16, 128  }
0x1846   : > { %3717 = vsyncadd (!%p3152_p6), %s2543_s16, 4294967168  ;;  %p25_p0 = scmp.ge.s32.totalorder %s3996_s23, 4   ;;  %s4380_s27 = smov %s3724_s28 }
0x1847   : > { %s4381_s28 = smov %s3728_s29  ;;  %s4382_s29 = smov %s4008_s22 }
0x1848   : > { %s4383_s30 = smov %s3996_s23  ;;  %27 = sbr.rel (!%p25_p0) target bundleno = 9 (0x9), region = 130 }
0x184f   :  { %2548 = vsyncpa [#allocation3], 1 }
0x1850   :  { %2550 = vsyncpa [#allocation3 + $0x1], 1 }
0x1851   :  { %2551 = vsyncpa [#allocation6], 1 }
0x1852   :  { %2552 = vsyncpa [#allocation9], 1 }
0x1853   :  { %2553 = vsyncpa [#allocation12], 1 }
0x1854   :  { %2554 = vsyncpa [#allocation15], 1 }
0x1855   :  { %2555 = vsyncpa [#allocation4], 1 }
0x1856   :  { %2557 = vsyncpa [#allocation4 + $0x1], 1 }

</bundles_post_ra>
